<compile_context>
chip_gen: v5e
topology: v5e:2x2
jax: 0.10.0
libtpu: 0.0.40
codegen_flags: <defaults>
</compile_context>

<pallas_src>
import jax
import jax.numpy as jnp
from jax.experimental import pallas as pl
from jax.experimental.pallas import tpu as pltpu


def _round_up(x, m):
    return ((x + m - 1) // m) * m


# ----------------------------------------------------------------------------
# Kernel 1: fused feature pipeline
#   mix of (pre-tanh'd) entity + tanh(history) embeddings, fc1 matmul (bf16 W),
#   bn0 affine, Conv1d(3->C, k=3, pad=1) with bn1 folded, ReLU,
#   fc(C*D -> D) with bn2 folded as ONE (B, C*D) @ (C*D, D) bf16 MXU matmul,
#   ReLU.  Produces x of shape (B, D) in bf16 (consumed directly by kernel 2).
# ----------------------------------------------------------------------------
def feat_kernel(bn0s_ref, bn0t_ref, pw_ref, convw_ref, convb_ref,
                ent_ref, his_ref, rel_ref, hisrel_ref,
                fc1w_ref, fc1b_ref, fcw_ref, fcb_ref,
                x_ref):
    B, D = ent_ref.shape
    C = convw_ref.shape[0]
    pw = pw_ref[0]

    # e1_embed = pw * tanh(emb)[e1] + (1 - pw) * tanh(his_emb[e1])
    # (ent_ref is already tanh(embedding)[e1], computed once in the glue)
    ch0 = pw * ent_ref[...] + (1.0 - pw) * jnp.tanh(his_ref[...])
    # rel_embedded
    ch1 = rel_ref[...]
    # fc1(e_r_his_emb[e1])  -- bf16 weights, f32 accumulation
    ch2 = jnp.dot(hisrel_ref[...].astype(jnp.bfloat16), fc1w_ref[...],
                  preferred_element_type=jnp.float32) + fc1b_ref[...]

    # bn0 (eval mode) as per-channel affine
    ch0 = ch0 * bn0s_ref[0] + bn0t_ref[0]
    ch1 = ch1 * bn0s_ref[1] + bn0t_ref[1]
    ch2 = ch2 * bn0s_ref[2] + bn0t_ref[2]
    chans = (ch0, ch1, ch2)

    # Hoisted boundary masks (built once, reused for all 3 input channels).
    lane = jax.lax.broadcasted_iota(jnp.int32, (B, D), 1)
    is_first = lane == 0
    is_last = lane == D - 1

    def tap_prev(v):   # v[b, d-1], zero at d == 0
        return jnp.where(is_first, 0.0, pltpu.roll(v, 1, axis=1))

    def tap_next(v):   # v[b, d+1], zero at d == D-1
        return jnp.where(is_last, 0.0, pltpu.roll(v, D - 1, axis=1))

    taps = []
    for i in range(3):
        v = chans[i]
        taps += [tap_prev(v), v, tap_next(v)]           # index i*3 + j

    # Conv1d (bn1 folded) -> ReLU per output channel.  The 72 scalar weights
    # stay in SMEM; the LLO scheduler hoists/interleaves the splats with the
    # XLU roll work.
    planes = []
    for c in range(C):
        conv_c = jnp.zeros((B, D), jnp.float32) + convb_ref[c]
        for t in range(9):
            conv_c = conv_c + convw_ref[c, t] * taps[t]
        planes.append(jnp.maximum(conv_c, 0.0))          # ReLU

    # fc(flatten(relu(conv))) with bn2 folded: single K = C*D bf16 MXU matmul.
    feat = jnp.concatenate(planes, axis=1).astype(jnp.bfloat16)   # (B, C*D)
    y = jnp.dot(feat, fcw_ref[...],
                preferred_element_type=jnp.float32) + fcb_ref[...]
    x_ref[...] = jnp.maximum(y, 0.0).astype(x_ref.dtype)          # final ReLU (bf16)


# ----------------------------------------------------------------------------
# Kernel 2: scores = x @ tanh(embedding)^T, tiled over entities.
#   The table arrives pre-tanh'd, pre-transposed (D, N_pad) and in bf16, so
#   each grid step is a clean lane-dense (B, D) @ (D, TN) bf16 MXU matmul with
#   f32 accumulation -- purely HBM-bound streaming of the table.
# ----------------------------------------------------------------------------
def score_kernel(x_ref, embt_ref, out_ref):
    out_ref[...] = jnp.dot(x_ref[...], embt_ref[...],
                           preferred_element_type=jnp.float32)   # (B, TN)


# ----------------------------------------------------------------------------
# One-time precomputes (reusable across forward calls).
# ----------------------------------------------------------------------------
def precompute_entity_table(embedding, tn=8192):
    """tanh(embedding) (f32, (N, D)) plus a transposed, lane-padded bf16 copy
    (D, N_pad128) for the score matmul, and the chosen entity tile width TN."""
    N, D = embedding.shape
    e1_all = jnp.tanh(embedding.astype(jnp.float32))               # (N, D)
    n_pad = _round_up(N, 128)            # pad only to a lane multiple
    # Entity tile: as wide as requested, but keep >= 2 tiles so the "parallel"
    # entity grid axis can shard across the two TensorCores on v7x.
    TN = min(tn, n_pad)
    if n_pad > 128:
        TN = min(TN, max(128, _round_up(n_pad // 2, 128)))
    TN = max(128, (TN // 128) * 128)
    emb_t = e1_all.T.astype(jnp.bfloat16)                          # (D, N)
    if n_pad != N:
        emb_t = jnp.pad(emb_t, ((0, 0), (0, n_pad - N)))           # (D, N_pad)
    return e1_all, emb_t, TN


def fold_params(p, eps=1e-5):
    """Eval-mode BatchNorm folding + weight transposes / bf16 casts, hoisted
    out of the per-call path.  Includes both the bn2-folded (batch>1) and the
    plain (batch==1) fc variants."""
    C = p['conv1_w'].shape[0]
    D = p['fc_w'].shape[0]
    s0 = p['bn0_g'] / jnp.sqrt(p['bn0_rv'] + eps)
    t0 = p['bn0_b'] - p['bn0_rm'] * s0
    s1 = p['bn1_g'] / jnp.sqrt(p['bn1_rv'] + eps)
    t1 = p['bn1_b'] - p['bn1_rm'] * s1
    s2 = p['bn2_g'] / jnp.sqrt(p['bn2_rv'] + eps)
    t2 = p['bn2_b'] - p['bn2_rm'] * s2
    conv_w_f = p['conv1_w'] * s1[:, None, None]
    conv_b_f = p['conv1_b'] * s1 + t1
    return dict(
        bn0_s=s0.astype(jnp.float32),
        bn0_t=t0.astype(jnp.float32),
        convw=conv_w_f.reshape(C, 9).astype(jnp.float32),            # row order i*3+j
        convb=conv_b_f.astype(jnp.float32),
        fc1w_t=p['fc1_w'].T.astype(jnp.bfloat16),                    # (S, D)
        fc1b=p['fc1_b'].reshape(1, D).astype(jnp.float32),
        fcw_t_bn2=(p['fc_w'] * s2[:, None]).T.astype(jnp.bfloat16),  # (C*D, D), bn2 folded
        fcb_bn2=(p['fc_b'] * s2 + t2).reshape(1, D).astype(jnp.float32),
        fcw_t=p['fc_w'].T.astype(jnp.bfloat16),                      # (C*D, D), no bn2
        fcb=p['fc_b'].reshape(1, D).astype(jnp.float32),
    )


# ----------------------------------------------------------------------------
# Glue: gathers + the two pallas_calls.
# ----------------------------------------------------------------------------
def se_convtranse_forward(p, embedding, emb_rel, triplets, his_emb,
                          e_r_his_emb, pre_weight, pre_type='all',
                          entity_table=None, folded=None, tn=8192,
                          emb_buffers=2):
    if pre_type != 'all':
        raise NotImplementedError("only pre_type='all' is implemented (as in the reference forward)")
    B = triplets.shape[0]
    N, D = embedding.shape
    S = e_r_his_emb.shape[1]
    C = p['conv1_w'].shape[0]
    assert p['conv1_w'].shape[1:] == (3, 3), "kernel_size=3 is assumed"

    if entity_table is None:
        entity_table = precompute_entity_table(embedding, tn=tn)
    e1_all, emb_t, TN = entity_table
    N_pad = emb_t.shape[1]
    if folded is None:
        folded = fold_params(p)

    idx_e = triplets[:, 0]
    idx_r = triplets[:, 1]
    # data-dependent gathers stay in plain JAX (glue)
    ent_g = e1_all[idx_e]                                # (B, D) == tanh(embedding)[e1]
    his_g = his_emb[idx_e].astype(jnp.float32)           # (B, D)
    rel_g = emb_rel[idx_r].astype(jnp.float32)           # (B, D)
    hisrel_g = e_r_his_emb[idx_e].astype(jnp.float32)    # (B, S)

    # matches `if batch_size > 1: x = self.bn2(x)` (B is static under jit)
    if B > 1:
        fcw_t, fcb = folded['fcw_t_bn2'], folded['fcb_bn2']
    else:
        fcw_t, fcb = folded['fcw_t'], folded['fcb']

    pw = jnp.asarray([pre_weight], jnp.float32)
    smem = pl.BlockSpec(memory_space=pltpu.MemorySpace.SMEM)

    x_bf = pl.pallas_call(
        feat_kernel,
        out_shape=jax.ShapeDtypeStruct((B, D), jnp.bfloat16),
        grid=(1,),
        in_specs=[
            smem, smem, smem, smem, smem,                       # bn0_s, bn0_t, pw, convw, convb
            pl.BlockSpec((B, D), lambda i: (0, 0)),             # ent_g (already tanh'd)
            pl.BlockSpec((B, D), lambda i: (0, 0)),             # his_g
            pl.BlockSpec((B, D), lambda i: (0, 0)),             # rel_g
            pl.BlockSpec((B, S), lambda i: (0, 0)),             # hisrel_g
            pl.BlockSpec((S, D), lambda i: (0, 0)),             # fc1 weight^T (bf16)
            pl.BlockSpec((1, D), lambda i: (0, 0)),             # fc1 bias
            pl.BlockSpec((C * D, D), lambda i: (0, 0)),         # fc weight^T (bf16, bn2 folded)
            pl.BlockSpec((1, D), lambda i: (0, 0)),             # fc bias (bn2 folded)
        ],
        out_specs=pl.BlockSpec((B, D), lambda i: (0, 0)),
        compiler_params=pltpu.CompilerParams(dimension_semantics=("arbitrary",)),
    )(folded['bn0_s'], folded['bn0_t'], pw, folded['convw'], folded['convb'],
      ent_g, his_g, rel_g, hisrel_g, folded['fc1w_t'], folded['fc1b'],
      fcw_t, fcb)

    # Score matmul: grid over entity tiles; last block may be partial
    # (out-of-bounds output columns are discarded by Pallas).
    n_tiles = pl.cdiv(N_pad, TN)
    emb_spec = pl.BlockSpec((D, TN), lambda j: (0, j))
    if emb_buffers != 2:   # e.g. 3-deep on v7x to hide per-step overhead
        emb_spec = pl.BlockSpec((D, TN), lambda j: (0, j),
                                pipeline_mode=pl.Buffered(emb_buffers))

    # Explicit VMEM budget: table buffers + double-buffered f32 output + x.
    # (v5e default scoped VMEM is only 16 MiB; cap at 32 MiB, safe on all gens.)
    vmem_need = emb_buffers * D * TN * 2 + 2 * B * TN * 4 + 2 * B * D * 2
    vmem_limit = int(min(max(vmem_need + (2 << 20), 16 << 20), 32 << 20))

    scores = pl.pallas_call(
        score_kernel,
        out_shape=jax.ShapeDtypeStruct((B, N_pad), jnp.float32),
        grid=(n_tiles,),
        in_specs=[pl.BlockSpec((B, D), lambda j: (0, 0)), emb_spec],
        out_specs=pl.BlockSpec((B, TN), lambda j: (0, j)),
        compiler_params=pltpu.CompilerParams(
            dimension_semantics=("parallel",),
            vmem_limit_bytes=vmem_limit),
    )(x_bf, emb_t)

    if N_pad != N:
        # Only when N is not lane-aligned (<= 127 padded columns); callers that
        # can mask downstream may pass the padded scores through untouched.
        scores = scores[:, :N]
    return scores


# ----------------------------------------------------------------------------
# Pure-JAX reference (mirrors the PyTorch forward in eval mode, f32/HIGHEST).
# ----------------------------------------------------------------------------
def _reference(p, embedding, emb_rel, triplets, his_emb, e_r_his_emb,
               pre_weight):
    eps = 1e-5
    HI = jax.lax.Precision.HIGHEST
    B = triplets.shape[0]
    N, D = embedding.shape
    C = p['conv1_w'].shape[0]
    idx_e, idx_r = triplets[:, 0], triplets[:, 1]
    e1_all = jnp.tanh(embedding)
    e1_embed = pre_weight * e1_all[idx_e] + (1.0 - pre_weight) * jnp.tanh(his_emb[idx_e])
    rel_embedded = emb_rel[idx_r]
    hrel = jnp.matmul(e_r_his_emb[idx_e], p['fc1_w'].T, precision=HI) + p['fc1_b']
    stacked = jnp.stack([e1_embed, rel_embedded, hrel], axis=1)  # (B, 3, D)
    s0 = p['bn0_g'] / jnp.sqrt(p['bn0_rv'] + eps)
    stacked = stacked * s0[None, :, None] + (p['bn0_b'] - p['bn0_rm'] * s0)[None, :, None]
    xp = jnp.pad(stacked, ((0, 0), (0, 0), (1, 1)))
    conv = jnp.zeros((B, C, D), jnp.float32)
    for j in range(3):
        conv = conv + jnp.einsum('ci,bid->bcd', p['conv1_w'][:, :, j],
                                 xp[:, :, j:j + D], precision=HI)
    conv = conv + p['conv1_b'][None, :, None]
    s1 = p['bn1_g'] / jnp.sqrt(p['bn1_rv'] + eps)
    conv = conv * s1[None, :, None] + (p['bn1_b'] - p['bn1_rm'] * s1)[None, :, None]
    conv = jnp.maximum(conv, 0.0)
    y = jnp.matmul(conv.reshape(B, C * D), p['fc_w'].T, precision=HI) + p['fc_b']
    if B > 1:
        s2 = p['bn2_g'] / jnp.sqrt(p['bn2_rv'] + eps)
        y = y * s2[None, :] + (p['bn2_b'] - p['bn2_rm'] * s2)[None, :]
    y = jnp.maximum(y, 0.0)
    return jnp.matmul(y, e1_all.T, precision=HI)


def init_params(key, num_entities, embedding_dim, semantic_dim, channels=8, kernel_size=3):
    assert kernel_size == 3
    D, S, C = embedding_dim, semantic_dim, channels
    ks = jax.random.split(key, 6)
    ones, zeros = jnp.ones, jnp.zeros
    return dict(
        conv1_w=0.1 * jax.random.normal(ks[0], (C, 3, kernel_size), jnp.float32),
        conv1_b=0.1 * jax.random.normal(ks[1], (C,), jnp.float32),
        fc_w=0.05 * jax.random.normal(ks[2], (D, D * C), jnp.float32),
        fc_b=0.05 * jax.random.normal(ks[3], (D,), jnp.float32),
        fc1_w=0.1 * jax.random.normal(ks[4], (D, S), jnp.float32),
        fc1_b=0.1 * jax.random.normal(ks[5], (D,), jnp.float32),
        b=zeros((num_entities,), jnp.float32),  # registered but unused in forward
        bn0_g=ones((3,), jnp.float32), bn0_b=zeros((3,), jnp.float32),
        bn0_rm=zeros((3,), jnp.float32), bn0_rv=ones((3,), jnp.float32),
        bn1_g=ones((C,), jnp.float32), bn1_b=zeros((C,), jnp.float32),
        bn1_rm=zeros((C,), jnp.float32), bn1_rv=ones((C,), jnp.float32),
        bn2_g=ones((D,), jnp.float32), bn2_b=zeros((D,), jnp.float32),
        bn2_rm=zeros((D,), jnp.float32), bn2_rv=ones((D,), jnp.float32),
    )


if __name__ == "__main__":
    NUM_ENT, NUM_REL = 256, 16
    D, S, C, B = 128, 64, 8, 8
    PRE_WEIGHT = 0.7

    key = jax.random.PRNGKey(0)
    k = jax.random.split(key, 8)
    embedding = 0.5 * jax.random.normal(k[0], (NUM_ENT, D), jnp.float32)
    emb_rel = 0.5 * jax.random.normal(k[1], (NUM_REL, D), jnp.float32)
    his_emb = 0.5 * jax.random.normal(k[2], (NUM_ENT, D), jnp.float32)
    e_r_his_emb = 0.5 * jax.random.normal(k[3], (NUM_ENT, S), jnp.float32)
    triplets = jnp.stack([
        jax.random.randint(k[4], (B,), 0, NUM_ENT),
        jax.random.randint(k[5], (B,), 0, NUM_REL),
        jax.random.randint(k[6], (B,), 0, NUM_ENT)], axis=1).astype(jnp.int32)

    params = init_params(k[7], NUM_ENT, D, S, channels=C, kernel_size=3)

    # One-time precomputes (reusable across forward calls).
    table = precompute_entity_table(embedding, tn=8192)
    folded = fold_params(params)

    out = se_convtranse_forward(params, embedding, emb_rel, triplets, his_emb,
                                e_r_his_emb, PRE_WEIGHT, pre_type='all',
                                entity_table=table, folded=folded)
    out = jax.block_until_ready(out)
    assert out.shape == (B, NUM_ENT)

    ref = _reference(params, embedding, emb_rel, triplets, his_emb,
                     e_r_his_emb, PRE_WEIGHT)
    max_err = float(jnp.max(jnp.abs(out - ref)))
    scale = float(jnp.max(jnp.abs(ref))) + 1.0
    # bf16 entity table, bf16 fc/fc1 weights and bf16 activations -> ~3e-2 tol
    assert max_err <= 3e-2 * scale, f"mismatch: max_err={max_err}, scale={scale}"

    print("KERNEL_OK")
</pallas_src>

<mosaic_0001>
module attributes {stable_mosaic.version = 11 : i64} {
  func.func @feat_kernel(%arg0: i32, %arg1: memref<3xf32, #tpu.memory_space<smem>>, %arg2: memref<3xf32, #tpu.memory_space<smem>>, %arg3: memref<1xf32, #tpu.memory_space<smem>>, %arg4: memref<8x9xf32, #tpu.memory_space<smem>>, %arg5: memref<8xf32, #tpu.memory_space<smem>>, %arg6: memref<8x128xf32, #tpu.memory_space<vmem>>, %arg7: memref<8x128xf32, #tpu.memory_space<vmem>>, %arg8: memref<8x128xf32, #tpu.memory_space<vmem>>, %arg9: memref<8x64xf32, #tpu.memory_space<vmem>>, %arg10: memref<64x128xbf16, #tpu.memory_space<vmem>>, %arg11: memref<1x128xf32, #tpu.memory_space<vmem>>, %arg12: memref<1024x128xbf16, #tpu.memory_space<vmem>>, %arg13: memref<1x128xf32, #tpu.memory_space<vmem>>, %arg14: memref<8x128xbf16, #tpu.memory_space<vmem>>) attributes {dimension_semantics = [#tpu.dimension_semantics<arbitrary>], iteration_bounds = array<i64: 1>, scalar_prefetch = 0 : i64, scratch_operands = 0 : i64, tpu.core_type = #tpu.core_type<tc>, window_params = [{transform_indices = @transform_0, window_bounds = array<i64: 3>}, {transform_indices = @transform_1, window_bounds = array<i64: 3>}, {transform_indices = @transform_2, window_bounds = array<i64: 1>}, {transform_indices = @transform_3, window_bounds = array<i64: 8, 9>}, {transform_indices = @transform_4, window_bounds = array<i64: 8>}, {pipeline_mode = #tpu.pipeline_mode<synchronous>, transform_indices = @transform_5, window_bounds = array<i64: 8, 128>}, {pipeline_mode = #tpu.pipeline_mode<synchronous>, transform_indices = @transform_6, window_bounds = array<i64: 8, 128>}, {pipeline_mode = #tpu.pipeline_mode<synchronous>, transform_indices = @transform_7, window_bounds = array<i64: 8, 128>}, {pipeline_mode = #tpu.pipeline_mode<synchronous>, transform_indices = @transform_8, window_bounds = array<i64: 8, 64>}, {pipeline_mode = #tpu.pipeline_mode<synchronous>, transform_indices = @transform_9, window_bounds = array<i64: 64, 128>}, {pipeline_mode = #tpu.pipeline_mode<synchronous>, transform_indices = @transform_10, window_bounds = array<i64: 1, 128>}, {pipeline_mode = #tpu.pipeline_mode<synchronous>, transform_indices = @transform_11, window_bounds = array<i64: 1024, 128>}, {pipeline_mode = #tpu.pipeline_mode<synchronous>, transform_indices = @transform_12, window_bounds = array<i64: 1, 128>}, {pipeline_mode = #tpu.pipeline_mode<synchronous>, transform_indices = @transform_13, window_bounds = array<i64: 8, 128>}]} {
    %c0 = arith.constant 0 : index
    %0 = memref.load %arg3[%c0] : memref<1xf32, #tpu.memory_space<smem>>
    %c0_0 = arith.constant 0 : index
    %c0_1 = arith.constant 0 : index
    %1 = vector.load %arg6[%c0_0, %c0_1] : memref<8x128xf32, #tpu.memory_space<vmem>>, vector<8x128xf32>
    %2 = vector.broadcast %0 : f32 to vector<8x128xf32>
    %3 = arith.mulf %2, %1 : vector<8x128xf32>
    %cst = arith.constant 1.000000e+00 : f32
    %4 = arith.subf %cst, %0 : f32
    %c0_2 = arith.constant 0 : index
    %c0_3 = arith.constant 0 : index
    %5 = vector.load %arg7[%c0_2, %c0_3] : memref<8x128xf32, #tpu.memory_space<vmem>>, vector<8x128xf32>
    %6 = math.tanh %5 : vector<8x128xf32>
    %7 = vector.broadcast %4 : f32 to vector<8x128xf32>
    %8 = arith.mulf %7, %6 : vector<8x128xf32>
    %9 = arith.addf %3, %8 : vector<8x128xf32>
    %c0_4 = arith.constant 0 : index
    %c0_5 = arith.constant 0 : index
    %10 = vector.load %arg8[%c0_4, %c0_5] : memref<8x128xf32, #tpu.memory_space<vmem>>, vector<8x128xf32>
    %c0_6 = arith.constant 0 : index
    %c0_7 = arith.constant 0 : index
    %11 = vector.load %arg9[%c0_6, %c0_7] : memref<8x64xf32, #tpu.memory_space<vmem>>, vector<8x64xf32>
    %12 = arith.truncf %11 : vector<8x64xf32> to vector<8x64xbf16>
    %c0_8 = arith.constant 0 : index
    %c0_9 = arith.constant 0 : index
    %13 = vector.load %arg10[%c0_8, %c0_9] : memref<64x128xbf16, #tpu.memory_space<vmem>>, vector<64x128xbf16>
    %cst_10 = arith.constant dense<0.000000e+00> : vector<8x128xf32>
    %14 = tpu.matmul %12, %13, %cst_10 {dimension_numbers = #tpu.dot_dimension_numbers<[1], [0], [0], [1], [0, 0, 1, 1], [], []>} : vector<8x64xbf16>, vector<64x128xbf16>, vector<8x128xf32> -> vector<8x128xf32>
    %c0_11 = arith.constant 0 : index
    %c0_12 = arith.constant 0 : index
    %15 = vector.load %arg11[%c0_11, %c0_12] : memref<1x128xf32, #tpu.memory_space<vmem>>, vector<1x128xf32>
    %16 = vector.broadcast %15 : vector<1x128xf32> to vector<8x128xf32>
    %17 = arith.addf %14, %16 : vector<8x128xf32>
    %c0_13 = arith.constant 0 : index
    %18 = memref.load %arg1[%c0_13] : memref<3xf32, #tpu.memory_space<smem>>
    %19 = vector.broadcast %18 : f32 to vector<8x128xf32>
    %20 = arith.mulf %9, %19 : vector<8x128xf32>
    %c0_14 = arith.constant 0 : index
    %21 = memref.load %arg2[%c0_14] : memref<3xf32, #tpu.memory_space<smem>>
    %22 = vector.broadcast %21 : f32 to vector<8x128xf32>
    %23 = arith.addf %20, %22 : vector<8x128xf32>
    %c1 = arith.constant 1 : index
    %24 = memref.load %arg1[%c1] : memref<3xf32, #tpu.memory_space<smem>>
    %25 = vector.broadcast %24 : f32 to vector<8x128xf32>
    %26 = arith.mulf %10, %25 : vector<8x128xf32>
    %c1_15 = arith.constant 1 : index
    %27 = memref.load %arg2[%c1_15] : memref<3xf32, #tpu.memory_space<smem>>
    %28 = vector.broadcast %27 : f32 to vector<8x128xf32>
    %29 = arith.addf %26, %28 : vector<8x128xf32>
    %c2 = arith.constant 2 : index
    %30 = memref.load %arg1[%c2] : memref<3xf32, #tpu.memory_space<smem>>
    %31 = vector.broadcast %30 : f32 to vector<8x128xf32>
    %32 = arith.mulf %17, %31 : vector<8x128xf32>
    %c2_16 = arith.constant 2 : index
    %33 = memref.load %arg2[%c2_16] : memref<3xf32, #tpu.memory_space<smem>>
    %34 = vector.broadcast %33 : f32 to vector<8x128xf32>
    %35 = arith.addf %32, %34 : vector<8x128xf32>
    %36 = tpu.iota {dimensions = array<i32: 1>} : vector<8x128xi32>
    %c0_i32 = arith.constant 0 : i32
    %37 = vector.broadcast %c0_i32 : i32 to vector<8x128xi32>
    %38 = arith.cmpi eq, %36, %37 : vector<8x128xi32>
    %c127_i32 = arith.constant 127 : i32
    %39 = vector.broadcast %c127_i32 : i32 to vector<8x128xi32>
    %40 = arith.cmpi eq, %36, %39 : vector<8x128xi32>
    %c1_i32 = arith.constant 1 : i32
    %41 = tpu.dynamic_rotate %23 by %c1_i32 dim 1 : vector<8x128xf32>, i32 -> vector<8x128xf32>
    %cst_17 = arith.constant 0.000000e+00 : f32
    %42 = vector.broadcast %cst_17 : f32 to vector<8x128xf32>
    %43 = arith.select %38, %42, %41 : vector<8x128xi1>, vector<8x128xf32>
    %c127_i32_18 = arith.constant 127 : i32
    %44 = tpu.dynamic_rotate %23 by %c127_i32_18 dim 1 : vector<8x128xf32>, i32 -> vector<8x128xf32>
    %cst_19 = arith.constant 0.000000e+00 : f32
    %45 = vector.broadcast %cst_19 : f32 to vector<8x128xf32>
    %46 = arith.select %40, %45, %44 : vector<8x128xi1>, vector<8x128xf32>
    %c1_i32_20 = arith.constant 1 : i32
    %47 = tpu.dynamic_rotate %29 by %c1_i32_20 dim 1 : vector<8x128xf32>, i32 -> vector<8x128xf32>
    %cst_21 = arith.constant 0.000000e+00 : f32
    %48 = vector.broadcast %cst_21 : f32 to vector<8x128xf32>
    %49 = arith.select %38, %48, %47 : vector<8x128xi1>, vector<8x128xf32>
    %c127_i32_22 = arith.constant 127 : i32
    %50 = tpu.dynamic_rotate %29 by %c127_i32_22 dim 1 : vector<8x128xf32>, i32 -> vector<8x128xf32>
    %cst_23 = arith.constant 0.000000e+00 : f32
    %51 = vector.broadcast %cst_23 : f32 to vector<8x128xf32>
    %52 = arith.select %40, %51, %50 : vector<8x128xi1>, vector<8x128xf32>
    %c1_i32_24 = arith.constant 1 : i32
    %53 = tpu.dynamic_rotate %35 by %c1_i32_24 dim 1 : vector<8x128xf32>, i32 -> vector<8x128xf32>
    %cst_25 = arith.constant 0.000000e+00 : f32
    %54 = vector.broadcast %cst_25 : f32 to vector<8x128xf32>
    %55 = arith.select %38, %54, %53 : vector<8x128xi1>, vector<8x128xf32>
    %c127_i32_26 = arith.constant 127 : i32
    %56 = tpu.dynamic_rotate %35 by %c127_i32_26 dim 1 : vector<8x128xf32>, i32 -> vector<8x128xf32>
    %cst_27 = arith.constant 0.000000e+00 : f32
    %57 = vector.broadcast %cst_27 : f32 to vector<8x128xf32>
    %58 = arith.select %40, %57, %56 : vector<8x128xi1>, vector<8x128xf32>
    %cst_28 = arith.constant 0.000000e+00 : f32
    %59 = vector.broadcast %cst_28 : f32 to vector<8x128xf32>
    %c0_29 = arith.constant 0 : index
    %60 = memref.load %arg5[%c0_29] : memref<8xf32, #tpu.memory_space<smem>>
    %61 = vector.broadcast %60 : f32 to vector<8x128xf32>
    %62 = arith.addf %59, %61 : vector<8x128xf32>
    %c0_30 = arith.constant 0 : index
    %c0_31 = arith.constant 0 : index
    %63 = memref.load %arg4[%c0_30, %c0_31] : memref<8x9xf32, #tpu.memory_space<smem>>
    %64 = vector.broadcast %63 : f32 to vector<8x128xf32>
    %65 = arith.mulf %64, %43 : vector<8x128xf32>
    %66 = arith.addf %62, %65 : vector<8x128xf32>
    %c0_32 = arith.constant 0 : index
    %c1_33 = arith.constant 1 : index
    %67 = memref.load %arg4[%c0_32, %c1_33] : memref<8x9xf32, #tpu.memory_space<smem>>
    %68 = vector.broadcast %67 : f32 to vector<8x128xf32>
    %69 = arith.mulf %68, %23 : vector<8x128xf32>
    %70 = arith.addf %66, %69 : vector<8x128xf32>
    %c0_34 = arith.constant 0 : index
    %c2_35 = arith.constant 2 : index
    %71 = memref.load %arg4[%c0_34, %c2_35] : memref<8x9xf32, #tpu.memory_space<smem>>
    %72 = vector.broadcast %71 : f32 to vector<8x128xf32>
    %73 = arith.mulf %72, %46 : vector<8x128xf32>
    %74 = arith.addf %70, %73 : vector<8x128xf32>
    %c0_36 = arith.constant 0 : index
    %c3 = arith.constant 3 : index
    %75 = memref.load %arg4[%c0_36, %c3] : memref<8x9xf32, #tpu.memory_space<smem>>
    %76 = vector.broadcast %75 : f32 to vector<8x128xf32>
    %77 = arith.mulf %76, %49 : vector<8x128xf32>
    %78 = arith.addf %74, %77 : vector<8x128xf32>
    %c0_37 = arith.constant 0 : index
    %c4 = arith.constant 4 : index
    %79 = memref.load %arg4[%c0_37, %c4] : memref<8x9xf32, #tpu.memory_space<smem>>
    %80 = vector.broadcast %79 : f32 to vector<8x128xf32>
    %81 = arith.mulf %80, %29 : vector<8x128xf32>
    %82 = arith.addf %78, %81 : vector<8x128xf32>
    %c0_38 = arith.constant 0 : index
    %c5 = arith.constant 5 : index
    %83 = memref.load %arg4[%c0_38, %c5] : memref<8x9xf32, #tpu.memory_space<smem>>
    %84 = vector.broadcast %83 : f32 to vector<8x128xf32>
    %85 = arith.mulf %84, %52 : vector<8x128xf32>
    %86 = arith.addf %82, %85 : vector<8x128xf32>
    %c0_39 = arith.constant 0 : index
    %c6 = arith.constant 6 : index
    %87 = memref.load %arg4[%c0_39, %c6] : memref<8x9xf32, #tpu.memory_space<smem>>
    %88 = vector.broadcast %87 : f32 to vector<8x128xf32>
    %89 = arith.mulf %88, %55 : vector<8x128xf32>
    %90 = arith.addf %86, %89 : vector<8x128xf32>
    %c0_40 = arith.constant 0 : index
    %c7 = arith.constant 7 : index
    %91 = memref.load %arg4[%c0_40, %c7] : memref<8x9xf32, #tpu.memory_space<smem>>
    %92 = vector.broadcast %91 : f32 to vector<8x128xf32>
    %93 = arith.mulf %92, %35 : vector<8x128xf32>
    %94 = arith.addf %90, %93 : vector<8x128xf32>
    %c0_41 = arith.constant 0 : index
    %c8 = arith.constant 8 : index
    %95 = memref.load %arg4[%c0_41, %c8] : memref<8x9xf32, #tpu.memory_space<smem>>
    %96 = vector.broadcast %95 : f32 to vector<8x128xf32>
    %97 = arith.mulf %96, %58 : vector<8x128xf32>
    %98 = arith.addf %94, %97 : vector<8x128xf32>
    %cst_42 = arith.constant 0.000000e+00 : f32
    %99 = vector.broadcast %cst_42 : f32 to vector<8x128xf32>
    %100 = arith.maximumf %98, %99 : vector<8x128xf32>
    %cst_43 = arith.constant 0.000000e+00 : f32
    %101 = vector.broadcast %cst_43 : f32 to vector<8x128xf32>
    %c1_44 = arith.constant 1 : index
    %102 = memref.load %arg5[%c1_44] : memref<8xf32, #tpu.memory_space<smem>>
    %103 = vector.broadcast %102 : f32 to vector<8x128xf32>
    %104 = arith.addf %101, %103 : vector<8x128xf32>
    %c1_45 = arith.constant 1 : index
    %c0_46 = arith.constant 0 : index
    %105 = memref.load %arg4[%c1_45, %c0_46] : memref<8x9xf32, #tpu.memory_space<smem>>
    %106 = vector.broadcast %105 : f32 to vector<8x128xf32>
    %107 = arith.mulf %106, %43 : vector<8x128xf32>
    %108 = arith.addf %104, %107 : vector<8x128xf32>
    %c1_47 = arith.constant 1 : index
    %c1_48 = arith.constant 1 : index
    %109 = memref.load %arg4[%c1_47, %c1_48] : memref<8x9xf32, #tpu.memory_space<smem>>
    %110 = vector.broadcast %109 : f32 to vector<8x128xf32>
    %111 = arith.mulf %110, %23 : vector<8x128xf32>
    %112 = arith.addf %108, %111 : vector<8x128xf32>
    %c1_49 = arith.constant 1 : index
    %c2_50 = arith.constant 2 : index
    %113 = memref.load %arg4[%c1_49, %c2_50] : memref<8x9xf32, #tpu.memory_space<smem>>
    %114 = vector.broadcast %113 : f32 to vector<8x128xf32>
    %115 = arith.mulf %114, %46 : vector<8x128xf32>
    %116 = arith.addf %112, %115 : vector<8x128xf32>
    %c1_51 = arith.constant 1 : index
    %c3_52 = arith.constant 3 : index
    %117 = memref.load %arg4[%c1_51, %c3_52] : memref<8x9xf32, #tpu.memory_space<smem>>
    %118 = vector.broadcast %117 : f32 to vector<8x128xf32>
    %119 = arith.mulf %118, %49 : vector<8x128xf32>
    %120 = arith.addf %116, %119 : vector<8x128xf32>
    %c1_53 = arith.constant 1 : index
    %c4_54 = arith.constant 4 : index
    %121 = memref.load %arg4[%c1_53, %c4_54] : memref<8x9xf32, #tpu.memory_space<smem>>
    %122 = vector.broadcast %121 : f32 to vector<8x128xf32>
    %123 = arith.mulf %122, %29 : vector<8x128xf32>
    %124 = arith.addf %120, %123 : vector<8x128xf32>
    %c1_55 = arith.constant 1 : index
    %c5_56 = arith.constant 5 : index
    %125 = memref.load %arg4[%c1_55, %c5_56] : memref<8x9xf32, #tpu.memory_space<smem>>
    %126 = vector.broadcast %125 : f32 to vector<8x128xf32>
    %127 = arith.mulf %126, %52 : vector<8x128xf32>
    %128 = arith.addf %124, %127 : vector<8x128xf32>
    %c1_57 = arith.constant 1 : index
    %c6_58 = arith.constant 6 : index
    %129 = memref.load %arg4[%c1_57, %c6_58] : memref<8x9xf32, #tpu.memory_space<smem>>
    %130 = vector.broadcast %129 : f32 to vector<8x128xf32>
    %131 = arith.mulf %130, %55 : vector<8x128xf32>
    %132 = arith.addf %128, %131 : vector<8x128xf32>
    %c1_59 = arith.constant 1 : index
    %c7_60 = arith.constant 7 : index
    %133 = memref.load %arg4[%c1_59, %c7_60] : memref<8x9xf32, #tpu.memory_space<smem>>
    %134 = vector.broadcast %133 : f32 to vector<8x128xf32>
    %135 = arith.mulf %134, %35 : vector<8x128xf32>
    %136 = arith.addf %132, %135 : vector<8x128xf32>
    %c1_61 = arith.constant 1 : index
    %c8_62 = arith.constant 8 : index
    %137 = memref.load %arg4[%c1_61, %c8_62] : memref<8x9xf32, #tpu.memory_space<smem>>
    %138 = vector.broadcast %137 : f32 to vector<8x128xf32>
    %139 = arith.mulf %138, %58 : vector<8x128xf32>
    %140 = arith.addf %136, %139 : vector<8x128xf32>
    %cst_63 = arith.constant 0.000000e+00 : f32
    %141 = vector.broadcast %cst_63 : f32 to vector<8x128xf32>
    %142 = arith.maximumf %140, %141 : vector<8x128xf32>
    %cst_64 = arith.constant 0.000000e+00 : f32
    %143 = vector.broadcast %cst_64 : f32 to vector<8x128xf32>
    %c2_65 = arith.constant 2 : index
    %144 = memref.load %arg5[%c2_65] : memref<8xf32, #tpu.memory_space<smem>>
    %145 = vector.broadcast %144 : f32 to vector<8x128xf32>
    %146 = arith.addf %143, %145 : vector<8x128xf32>
    %c2_66 = arith.constant 2 : index
    %c0_67 = arith.constant 0 : index
    %147 = memref.load %arg4[%c2_66, %c0_67] : memref<8x9xf32, #tpu.memory_space<smem>>
    %148 = vector.broadcast %147 : f32 to vector<8x128xf32>
    %149 = arith.mulf %148, %43 : vector<8x128xf32>
    %150 = arith.addf %146, %149 : vector<8x128xf32>
    %c2_68 = arith.constant 2 : index
    %c1_69 = arith.constant 1 : index
    %151 = memref.load %arg4[%c2_68, %c1_69] : memref<8x9xf32, #tpu.memory_space<smem>>
    %152 = vector.broadcast %151 : f32 to vector<8x128xf32>
    %153 = arith.mulf %152, %23 : vector<8x128xf32>
    %154 = arith.addf %150, %153 : vector<8x128xf32>
    %c2_70 = arith.constant 2 : index
    %c2_71 = arith.constant 2 : index
    %155 = memref.load %arg4[%c2_70, %c2_71] : memref<8x9xf32, #tpu.memory_space<smem>>
    %156 = vector.broadcast %155 : f32 to vector<8x128xf32>
    %157 = arith.mulf %156, %46 : vector<8x128xf32>
    %158 = arith.addf %154, %157 : vector<8x128xf32>
    %c2_72 = arith.constant 2 : index
    %c3_73 = arith.constant 3 : index
    %159 = memref.load %arg4[%c2_72, %c3_73] : memref<8x9xf32, #tpu.memory_space<smem>>
    %160 = vector.broadcast %159 : f32 to vector<8x128xf32>
    %161 = arith.mulf %160, %49 : vector<8x128xf32>
    %162 = arith.addf %158, %161 : vector<8x128xf32>
    %c2_74 = arith.constant 2 : index
    %c4_75 = arith.constant 4 : index
    %163 = memref.load %arg4[%c2_74, %c4_75] : memref<8x9xf32, #tpu.memory_space<smem>>
    %164 = vector.broadcast %163 : f32 to vector<8x128xf32>
    %165 = arith.mulf %164, %29 : vector<8x128xf32>
    %166 = arith.addf %162, %165 : vector<8x128xf32>
    %c2_76 = arith.constant 2 : index
    %c5_77 = arith.constant 5 : index
    %167 = memref.load %arg4[%c2_76, %c5_77] : memref<8x9xf32, #tpu.memory_space<smem>>
    %168 = vector.broadcast %167 : f32 to vector<8x128xf32>
    %169 = arith.mulf %168, %52 : vector<8x128xf32>
    %170 = arith.addf %166, %169 : vector<8x128xf32>
    %c2_78 = arith.constant 2 : index
    %c6_79 = arith.constant 6 : index
    %171 = memref.load %arg4[%c2_78, %c6_79] : memref<8x9xf32, #tpu.memory_space<smem>>
    %172 = vector.broadcast %171 : f32 to vector<8x128xf32>
    %173 = arith.mulf %172, %55 : vector<8x128xf32>
    %174 = arith.addf %170, %173 : vector<8x128xf32>
    %c2_80 = arith.constant 2 : index
    %c7_81 = arith.constant 7 : index
    %175 = memref.load %arg4[%c2_80, %c7_81] : memref<8x9xf32, #tpu.memory_space<smem>>
    %176 = vector.broadcast %175 : f32 to vector<8x128xf32>
    %177 = arith.mulf %176, %35 : vector<8x128xf32>
    %178 = arith.addf %174, %177 : vector<8x128xf32>
    %c2_82 = arith.constant 2 : index
    %c8_83 = arith.constant 8 : index
    %179 = memref.load %arg4[%c2_82, %c8_83] : memref<8x9xf32, #tpu.memory_space<smem>>
    %180 = vector.broadcast %179 : f32 to vector<8x128xf32>
    %181 = arith.mulf %180, %58 : vector<8x128xf32>
    %182 = arith.addf %178, %181 : vector<8x128xf32>
    %cst_84 = arith.constant 0.000000e+00 : f32
    %183 = vector.broadcast %cst_84 : f32 to vector<8x128xf32>
    %184 = arith.maximumf %182, %183 : vector<8x128xf32>
    %cst_85 = arith.constant 0.000000e+00 : f32
    %185 = vector.broadcast %cst_85 : f32 to vector<8x128xf32>
    %c3_86 = arith.constant 3 : index
    %186 = memref.load %arg5[%c3_86] : memref<8xf32, #tpu.memory_space<smem>>
    %187 = vector.broadcast %186 : f32 to vector<8x128xf32>
    %188 = arith.addf %185, %187 : vector<8x128xf32>
    %c3_87 = arith.constant 3 : index
    %c0_88 = arith.constant 0 : index
    %189 = memref.load %arg4[%c3_87, %c0_88] : memref<8x9xf32, #tpu.memory_space<smem>>
    %190 = vector.broadcast %189 : f32 to vector<8x128xf32>
    %191 = arith.mulf %190, %43 : vector<8x128xf32>
    %192 = arith.addf %188, %191 : vector<8x128xf32>
    %c3_89 = arith.constant 3 : index
    %c1_90 = arith.constant 1 : index
    %193 = memref.load %arg4[%c3_89, %c1_90] : memref<8x9xf32, #tpu.memory_space<smem>>
    %194 = vector.broadcast %193 : f32 to vector<8x128xf32>
    %195 = arith.mulf %194, %23 : vector<8x128xf32>
    %196 = arith.addf %192, %195 : vector<8x128xf32>
    %c3_91 = arith.constant 3 : index
    %c2_92 = arith.constant 2 : index
    %197 = memref.load %arg4[%c3_91, %c2_92] : memref<8x9xf32, #tpu.memory_space<smem>>
    %198 = vector.broadcast %197 : f32 to vector<8x128xf32>
    %199 = arith.mulf %198, %46 : vector<8x128xf32>
    %200 = arith.addf %196, %199 : vector<8x128xf32>
    %c3_93 = arith.constant 3 : index
    %c3_94 = arith.constant 3 : index
    %201 = memref.load %arg4[%c3_93, %c3_94] : memref<8x9xf32, #tpu.memory_space<smem>>
    %202 = vector.broadcast %201 : f32 to vector<8x128xf32>
    %203 = arith.mulf %202, %49 : vector<8x128xf32>
    %204 = arith.addf %200, %203 : vector<8x128xf32>
    %c3_95 = arith.constant 3 : index
    %c4_96 = arith.constant 4 : index
    %205 = memref.load %arg4[%c3_95, %c4_96] : memref<8x9xf32, #tpu.memory_space<smem>>
    %206 = vector.broadcast %205 : f32 to vector<8x128xf32>
    %207 = arith.mulf %206, %29 : vector<8x128xf32>
    %208 = arith.addf %204, %207 : vector<8x128xf32>
    %c3_97 = arith.constant 3 : index
    %c5_98 = arith.constant 5 : index
    %209 = memref.load %arg4[%c3_97, %c5_98] : memref<8x9xf32, #tpu.memory_space<smem>>
    %210 = vector.broadcast %209 : f32 to vector<8x128xf32>
    %211 = arith.mulf %210, %52 : vector<8x128xf32>
    %212 = arith.addf %208, %211 : vector<8x128xf32>
    %c3_99 = arith.constant 3 : index
    %c6_100 = arith.constant 6 : index
    %213 = memref.load %arg4[%c3_99, %c6_100] : memref<8x9xf32, #tpu.memory_space<smem>>
    %214 = vector.broadcast %213 : f32 to vector<8x128xf32>
    %215 = arith.mulf %214, %55 : vector<8x128xf32>
    %216 = arith.addf %212, %215 : vector<8x128xf32>
    %c3_101 = arith.constant 3 : index
    %c7_102 = arith.constant 7 : index
    %217 = memref.load %arg4[%c3_101, %c7_102] : memref<8x9xf32, #tpu.memory_space<smem>>
    %218 = vector.broadcast %217 : f32 to vector<8x128xf32>
    %219 = arith.mulf %218, %35 : vector<8x128xf32>
    %220 = arith.addf %216, %219 : vector<8x128xf32>
    %c3_103 = arith.constant 3 : index
    %c8_104 = arith.constant 8 : index
    %221 = memref.load %arg4[%c3_103, %c8_104] : memref<8x9xf32, #tpu.memory_space<smem>>
    %222 = vector.broadcast %221 : f32 to vector<8x128xf32>
    %223 = arith.mulf %222, %58 : vector<8x128xf32>
    %224 = arith.addf %220, %223 : vector<8x128xf32>
    %cst_105 = arith.constant 0.000000e+00 : f32
    %225 = vector.broadcast %cst_105 : f32 to vector<8x128xf32>
    %226 = arith.maximumf %224, %225 : vector<8x128xf32>
    %cst_106 = arith.constant 0.000000e+00 : f32
    %227 = vector.broadcast %cst_106 : f32 to vector<8x128xf32>
    %c4_107 = arith.constant 4 : index
    %228 = memref.load %arg5[%c4_107] : memref<8xf32, #tpu.memory_space<smem>>
    %229 = vector.broadcast %228 : f32 to vector<8x128xf32>
    %230 = arith.addf %227, %229 : vector<8x128xf32>
    %c4_108 = arith.constant 4 : index
    %c0_109 = arith.constant 0 : index
    %231 = memref.load %arg4[%c4_108, %c0_109] : memref<8x9xf32, #tpu.memory_space<smem>>
    %232 = vector.broadcast %231 : f32 to vector<8x128xf32>
    %233 = arith.mulf %232, %43 : vector<8x128xf32>
    %234 = arith.addf %230, %233 : vector<8x128xf32>
    %c4_110 = arith.constant 4 : index
    %c1_111 = arith.constant 1 : index
    %235 = memref.load %arg4[%c4_110, %c1_111] : memref<8x9xf32, #tpu.memory_space<smem>>
    %236 = vector.broadcast %235 : f32 to vector<8x128xf32>
    %237 = arith.mulf %236, %23 : vector<8x128xf32>
    %238 = arith.addf %234, %237 : vector<8x128xf32>
    %c4_112 = arith.constant 4 : index
    %c2_113 = arith.constant 2 : index
    %239 = memref.load %arg4[%c4_112, %c2_113] : memref<8x9xf32, #tpu.memory_space<smem>>
    %240 = vector.broadcast %239 : f32 to vector<8x128xf32>
    %241 = arith.mulf %240, %46 : vector<8x128xf32>
    %242 = arith.addf %238, %241 : vector<8x128xf32>
    %c4_114 = arith.constant 4 : index
    %c3_115 = arith.constant 3 : index
    %243 = memref.load %arg4[%c4_114, %c3_115] : memref<8x9xf32, #tpu.memory_space<smem>>
    %244 = vector.broadcast %243 : f32 to vector<8x128xf32>
    %245 = arith.mulf %244, %49 : vector<8x128xf32>
    %246 = arith.addf %242, %245 : vector<8x128xf32>
    %c4_116 = arith.constant 4 : index
    %c4_117 = arith.constant 4 : index
    %247 = memref.load %arg4[%c4_116, %c4_117] : memref<8x9xf32, #tpu.memory_space<smem>>
    %248 = vector.broadcast %247 : f32 to vector<8x128xf32>
    %249 = arith.mulf %248, %29 : vector<8x128xf32>
    %250 = arith.addf %246, %249 : vector<8x128xf32>
    %c4_118 = arith.constant 4 : index
    %c5_119 = arith.constant 5 : index
    %251 = memref.load %arg4[%c4_118, %c5_119] : memref<8x9xf32, #tpu.memory_space<smem>>
    %252 = vector.broadcast %251 : f32 to vector<8x128xf32>
    %253 = arith.mulf %252, %52 : vector<8x128xf32>
    %254 = arith.addf %250, %253 : vector<8x128xf32>
    %c4_120 = arith.constant 4 : index
    %c6_121 = arith.constant 6 : index
    %255 = memref.load %arg4[%c4_120, %c6_121] : memref<8x9xf32, #tpu.memory_space<smem>>
    %256 = vector.broadcast %255 : f32 to vector<8x128xf32>
    %257 = arith.mulf %256, %55 : vector<8x128xf32>
    %258 = arith.addf %254, %257 : vector<8x128xf32>
    %c4_122 = arith.constant 4 : index
    %c7_123 = arith.constant 7 : index
    %259 = memref.load %arg4[%c4_122, %c7_123] : memref<8x9xf32, #tpu.memory_space<smem>>
    %260 = vector.broadcast %259 : f32 to vector<8x128xf32>
    %261 = arith.mulf %260, %35 : vector<8x128xf32>
    %262 = arith.addf %258, %261 : vector<8x128xf32>
    %c4_124 = arith.constant 4 : index
    %c8_125 = arith.constant 8 : index
    %263 = memref.load %arg4[%c4_124, %c8_125] : memref<8x9xf32, #tpu.memory_space<smem>>
    %264 = vector.broadcast %263 : f32 to vector<8x128xf32>
    %265 = arith.mulf %264, %58 : vector<8x128xf32>
    %266 = arith.addf %262, %265 : vector<8x128xf32>
    %cst_126 = arith.constant 0.000000e+00 : f32
    %267 = vector.broadcast %cst_126 : f32 to vector<8x128xf32>
    %268 = arith.maximumf %266, %267 : vector<8x128xf32>
    %cst_127 = arith.constant 0.000000e+00 : f32
    %269 = vector.broadcast %cst_127 : f32 to vector<8x128xf32>
    %c5_128 = arith.constant 5 : index
    %270 = memref.load %arg5[%c5_128] : memref<8xf32, #tpu.memory_space<smem>>
    %271 = vector.broadcast %270 : f32 to vector<8x128xf32>
    %272 = arith.addf %269, %271 : vector<8x128xf32>
    %c5_129 = arith.constant 5 : index
    %c0_130 = arith.constant 0 : index
    %273 = memref.load %arg4[%c5_129, %c0_130] : memref<8x9xf32, #tpu.memory_space<smem>>
    %274 = vector.broadcast %273 : f32 to vector<8x128xf32>
    %275 = arith.mulf %274, %43 : vector<8x128xf32>
    %276 = arith.addf %272, %275 : vector<8x128xf32>
    %c5_131 = arith.constant 5 : index
    %c1_132 = arith.constant 1 : index
    %277 = memref.load %arg4[%c5_131, %c1_132] : memref<8x9xf32, #tpu.memory_space<smem>>
    %278 = vector.broadcast %277 : f32 to vector<8x128xf32>
    %279 = arith.mulf %278, %23 : vector<8x128xf32>
    %280 = arith.addf %276, %279 : vector<8x128xf32>
    %c5_133 = arith.constant 5 : index
    %c2_134 = arith.constant 2 : index
    %281 = memref.load %arg4[%c5_133, %c2_134] : memref<8x9xf32, #tpu.memory_space<smem>>
    %282 = vector.broadcast %281 : f32 to vector<8x128xf32>
    %283 = arith.mulf %282, %46 : vector<8x128xf32>
    %284 = arith.addf %280, %283 : vector<8x128xf32>
    %c5_135 = arith.constant 5 : index
    %c3_136 = arith.constant 3 : index
    %285 = memref.load %arg4[%c5_135, %c3_136] : memref<8x9xf32, #tpu.memory_space<smem>>
    %286 = vector.broadcast %285 : f32 to vector<8x128xf32>
    %287 = arith.mulf %286, %49 : vector<8x128xf32>
    %288 = arith.addf %284, %287 : vector<8x128xf32>
    %c5_137 = arith.constant 5 : index
    %c4_138 = arith.constant 4 : index
    %289 = memref.load %arg4[%c5_137, %c4_138] : memref<8x9xf32, #tpu.memory_space<smem>>
    %290 = vector.broadcast %289 : f32 to vector<8x128xf32>
    %291 = arith.mulf %290, %29 : vector<8x128xf32>
    %292 = arith.addf %288, %291 : vector<8x128xf32>
    %c5_139 = arith.constant 5 : index
    %c5_140 = arith.constant 5 : index
    %293 = memref.load %arg4[%c5_139, %c5_140] : memref<8x9xf32, #tpu.memory_space<smem>>
    %294 = vector.broadcast %293 : f32 to vector<8x128xf32>
    %295 = arith.mulf %294, %52 : vector<8x128xf32>
    %296 = arith.addf %292, %295 : vector<8x128xf32>
    %c5_141 = arith.constant 5 : index
    %c6_142 = arith.constant 6 : index
    %297 = memref.load %arg4[%c5_141, %c6_142] : memref<8x9xf32, #tpu.memory_space<smem>>
    %298 = vector.broadcast %297 : f32 to vector<8x128xf32>
    %299 = arith.mulf %298, %55 : vector<8x128xf32>
    %300 = arith.addf %296, %299 : vector<8x128xf32>
    %c5_143 = arith.constant 5 : index
    %c7_144 = arith.constant 7 : index
    %301 = memref.load %arg4[%c5_143, %c7_144] : memref<8x9xf32, #tpu.memory_space<smem>>
    %302 = vector.broadcast %301 : f32 to vector<8x128xf32>
    %303 = arith.mulf %302, %35 : vector<8x128xf32>
    %304 = arith.addf %300, %303 : vector<8x128xf32>
    %c5_145 = arith.constant 5 : index
    %c8_146 = arith.constant 8 : index
    %305 = memref.load %arg4[%c5_145, %c8_146] : memref<8x9xf32, #tpu.memory_space<smem>>
    %306 = vector.broadcast %305 : f32 to vector<8x128xf32>
    %307 = arith.mulf %306, %58 : vector<8x128xf32>
    %308 = arith.addf %304, %307 : vector<8x128xf32>
    %cst_147 = arith.constant 0.000000e+00 : f32
    %309 = vector.broadcast %cst_147 : f32 to vector<8x128xf32>
    %310 = arith.maximumf %308, %309 : vector<8x128xf32>
    %cst_148 = arith.constant 0.000000e+00 : f32
    %311 = vector.broadcast %cst_148 : f32 to vector<8x128xf32>
    %c6_149 = arith.constant 6 : index
    %312 = memref.load %arg5[%c6_149] : memref<8xf32, #tpu.memory_space<smem>>
    %313 = vector.broadcast %312 : f32 to vector<8x128xf32>
    %314 = arith.addf %311, %313 : vector<8x128xf32>
    %c6_150 = arith.constant 6 : index
    %c0_151 = arith.constant 0 : index
    %315 = memref.load %arg4[%c6_150, %c0_151] : memref<8x9xf32, #tpu.memory_space<smem>>
    %316 = vector.broadcast %315 : f32 to vector<8x128xf32>
    %317 = arith.mulf %316, %43 : vector<8x128xf32>
    %318 = arith.addf %314, %317 : vector<8x128xf32>
    %c6_152 = arith.constant 6 : index
    %c1_153 = arith.constant 1 : index
    %319 = memref.load %arg4[%c6_152, %c1_153] : memref<8x9xf32, #tpu.memory_space<smem>>
    %320 = vector.broadcast %319 : f32 to vector<8x128xf32>
    %321 = arith.mulf %320, %23 : vector<8x128xf32>
    %322 = arith.addf %318, %321 : vector<8x128xf32>
    %c6_154 = arith.constant 6 : index
    %c2_155 = arith.constant 2 : index
    %323 = memref.load %arg4[%c6_154, %c2_155] : memref<8x9xf32, #tpu.memory_space<smem>>
    %324 = vector.broadcast %323 : f32 to vector<8x128xf32>
    %325 = arith.mulf %324, %46 : vector<8x128xf32>
    %326 = arith.addf %322, %325 : vector<8x128xf32>
    %c6_156 = arith.constant 6 : index
    %c3_157 = arith.constant 3 : index
    %327 = memref.load %arg4[%c6_156, %c3_157] : memref<8x9xf32, #tpu.memory_space<smem>>
    %328 = vector.broadcast %327 : f32 to vector<8x128xf32>
    %329 = arith.mulf %328, %49 : vector<8x128xf32>
    %330 = arith.addf %326, %329 : vector<8x128xf32>
    %c6_158 = arith.constant 6 : index
    %c4_159 = arith.constant 4 : index
    %331 = memref.load %arg4[%c6_158, %c4_159] : memref<8x9xf32, #tpu.memory_space<smem>>
    %332 = vector.broadcast %331 : f32 to vector<8x128xf32>
    %333 = arith.mulf %332, %29 : vector<8x128xf32>
    %334 = arith.addf %330, %333 : vector<8x128xf32>
    %c6_160 = arith.constant 6 : index
    %c5_161 = arith.constant 5 : index
    %335 = memref.load %arg4[%c6_160, %c5_161] : memref<8x9xf32, #tpu.memory_space<smem>>
    %336 = vector.broadcast %335 : f32 to vector<8x128xf32>
    %337 = arith.mulf %336, %52 : vector<8x128xf32>
    %338 = arith.addf %334, %337 : vector<8x128xf32>
    %c6_162 = arith.constant 6 : index
    %c6_163 = arith.constant 6 : index
    %339 = memref.load %arg4[%c6_162, %c6_163] : memref<8x9xf32, #tpu.memory_space<smem>>
    %340 = vector.broadcast %339 : f32 to vector<8x128xf32>
    %341 = arith.mulf %340, %55 : vector<8x128xf32>
    %342 = arith.addf %338, %341 : vector<8x128xf32>
    %c6_164 = arith.constant 6 : index
    %c7_165 = arith.constant 7 : index
    %343 = memref.load %arg4[%c6_164, %c7_165] : memref<8x9xf32, #tpu.memory_space<smem>>
    %344 = vector.broadcast %343 : f32 to vector<8x128xf32>
    %345 = arith.mulf %344, %35 : vector<8x128xf32>
    %346 = arith.addf %342, %345 : vector<8x128xf32>
    %c6_166 = arith.constant 6 : index
    %c8_167 = arith.constant 8 : index
    %347 = memref.load %arg4[%c6_166, %c8_167] : memref<8x9xf32, #tpu.memory_space<smem>>
    %348 = vector.broadcast %347 : f32 to vector<8x128xf32>
    %349 = arith.mulf %348, %58 : vector<8x128xf32>
    %350 = arith.addf %346, %349 : vector<8x128xf32>
    %cst_168 = arith.constant 0.000000e+00 : f32
    %351 = vector.broadcast %cst_168 : f32 to vector<8x128xf32>
    %352 = arith.maximumf %350, %351 : vector<8x128xf32>
    %cst_169 = arith.constant 0.000000e+00 : f32
    %353 = vector.broadcast %cst_169 : f32 to vector<8x128xf32>
    %c7_170 = arith.constant 7 : index
    %354 = memref.load %arg5[%c7_170] : memref<8xf32, #tpu.memory_space<smem>>
    %355 = vector.broadcast %354 : f32 to vector<8x128xf32>
    %356 = arith.addf %353, %355 : vector<8x128xf32>
    %c7_171 = arith.constant 7 : index
    %c0_172 = arith.constant 0 : index
    %357 = memref.load %arg4[%c7_171, %c0_172] : memref<8x9xf32, #tpu.memory_space<smem>>
    %358 = vector.broadcast %357 : f32 to vector<8x128xf32>
    %359 = arith.mulf %358, %43 : vector<8x128xf32>
    %360 = arith.addf %356, %359 : vector<8x128xf32>
    %c7_173 = arith.constant 7 : index
    %c1_174 = arith.constant 1 : index
    %361 = memref.load %arg4[%c7_173, %c1_174] : memref<8x9xf32, #tpu.memory_space<smem>>
    %362 = vector.broadcast %361 : f32 to vector<8x128xf32>
    %363 = arith.mulf %362, %23 : vector<8x128xf32>
    %364 = arith.addf %360, %363 : vector<8x128xf32>
    %c7_175 = arith.constant 7 : index
    %c2_176 = arith.constant 2 : index
    %365 = memref.load %arg4[%c7_175, %c2_176] : memref<8x9xf32, #tpu.memory_space<smem>>
    %366 = vector.broadcast %365 : f32 to vector<8x128xf32>
    %367 = arith.mulf %366, %46 : vector<8x128xf32>
    %368 = arith.addf %364, %367 : vector<8x128xf32>
    %c7_177 = arith.constant 7 : index
    %c3_178 = arith.constant 3 : index
    %369 = memref.load %arg4[%c7_177, %c3_178] : memref<8x9xf32, #tpu.memory_space<smem>>
    %370 = vector.broadcast %369 : f32 to vector<8x128xf32>
    %371 = arith.mulf %370, %49 : vector<8x128xf32>
    %372 = arith.addf %368, %371 : vector<8x128xf32>
    %c7_179 = arith.constant 7 : index
    %c4_180 = arith.constant 4 : index
    %373 = memref.load %arg4[%c7_179, %c4_180] : memref<8x9xf32, #tpu.memory_space<smem>>
    %374 = vector.broadcast %373 : f32 to vector<8x128xf32>
    %375 = arith.mulf %374, %29 : vector<8x128xf32>
    %376 = arith.addf %372, %375 : vector<8x128xf32>
    %c7_181 = arith.constant 7 : index
    %c5_182 = arith.constant 5 : index
    %377 = memref.load %arg4[%c7_181, %c5_182] : memref<8x9xf32, #tpu.memory_space<smem>>
    %378 = vector.broadcast %377 : f32 to vector<8x128xf32>
    %379 = arith.mulf %378, %52 : vector<8x128xf32>
    %380 = arith.addf %376, %379 : vector<8x128xf32>
    %c7_183 = arith.constant 7 : index
    %c6_184 = arith.constant 6 : index
    %381 = memref.load %arg4[%c7_183, %c6_184] : memref<8x9xf32, #tpu.memory_space<smem>>
    %382 = vector.broadcast %381 : f32 to vector<8x128xf32>
    %383 = arith.mulf %382, %55 : vector<8x128xf32>
    %384 = arith.addf %380, %383 : vector<8x128xf32>
    %c7_185 = arith.constant 7 : index
    %c7_186 = arith.constant 7 : index
    %385 = memref.load %arg4[%c7_185, %c7_186] : memref<8x9xf32, #tpu.memory_space<smem>>
    %386 = vector.broadcast %385 : f32 to vector<8x128xf32>
    %387 = arith.mulf %386, %35 : vector<8x128xf32>
    %388 = arith.addf %384, %387 : vector<8x128xf32>
    %c7_187 = arith.constant 7 : index
    %c8_188 = arith.constant 8 : index
    %389 = memref.load %arg4[%c7_187, %c8_188] : memref<8x9xf32, #tpu.memory_space<smem>>
    %390 = vector.broadcast %389 : f32 to vector<8x128xf32>
    %391 = arith.mulf %390, %58 : vector<8x128xf32>
    %392 = arith.addf %388, %391 : vector<8x128xf32>
    %cst_189 = arith.constant 0.000000e+00 : f32
    %393 = vector.broadcast %cst_189 : f32 to vector<8x128xf32>
    %394 = arith.maximumf %392, %393 : vector<8x128xf32>
    %395 = tpu.concatenate %100, %142, %184, %226, %268, %310, %352, %394 in 1 : vector<8x128xf32>, vector<8x128xf32>, vector<8x128xf32>, vector<8x128xf32>, vector<8x128xf32>, vector<8x128xf32>, vector<8x128xf32>, vector<8x128xf32> -> vector<8x1024xf32>
    %396 = arith.truncf %395 : vector<8x1024xf32> to vector<8x1024xbf16>
    %c0_190 = arith.constant 0 : index
    %c0_191 = arith.constant 0 : index
    %397 = vector.load %arg12[%c0_190, %c0_191] : memref<1024x128xbf16, #tpu.memory_space<vmem>>, vector<1024x128xbf16>
    %cst_192 = arith.constant dense<0.000000e+00> : vector<8x128xf32>
    %398 = tpu.matmul %396, %397, %cst_192 {dimension_numbers = #tpu.dot_dimension_numbers<[1], [0], [0], [1], [0, 0, 1, 1], [], []>} : vector<8x1024xbf16>, vector<1024x128xbf16>, vector<8x128xf32> -> vector<8x128xf32>
    %c0_193 = arith.constant 0 : index
    %c0_194 = arith.constant 0 : index
    %399 = vector.load %arg13[%c0_193, %c0_194] : memref<1x128xf32, #tpu.memory_space<vmem>>, vector<1x128xf32>
    %400 = vector.broadcast %399 : vector<1x128xf32> to vector<8x128xf32>
    %401 = arith.addf %398, %400 : vector<8x128xf32>
    %cst_195 = arith.constant 0.000000e+00 : f32
    %402 = vector.broadcast %cst_195 : f32 to vector<8x128xf32>
    %403 = arith.maximumf %401, %402 : vector<8x128xf32>
    %404 = arith.truncf %403 : vector<8x128xf32> to vector<8x128xbf16>
    %c0_196 = arith.constant 0 : index
    %c0_197 = arith.constant 0 : index
    %405 = vector.load %arg14[%c0_196, %c0_197] : memref<8x128xbf16, #tpu.memory_space<vmem>>, vector<8x128xbf16>
    tpu.vector_store %arg14[%c0_196, %c0_197], %404 {strides = array<i32>} : memref<8x128xbf16, #tpu.memory_space<vmem>>, vector<8x128xbf16>,
    return
  }
  func.func @transform_0(%arg0: i32) -> i32 {
    %c0_i32 = arith.constant 0 : i32
    %c0_i32_0 = arith.constant 0 : i32
    return %c0_i32 : i32
  }
  func.func @transform_1(%arg0: i32) -> i32 {
    %c0_i32 = arith.constant 0 : i32
    %c0_i32_0 = arith.constant 0 : i32
    return %c0_i32 : i32
  }
  func.func @transform_2(%arg0: i32) -> i32 {
    %c0_i32 = arith.constant 0 : i32
    %c0_i32_0 = arith.constant 0 : i32
    return %c0_i32 : i32
  }
  func.func @transform_3(%arg0: i32) -> (i32, i32) {
    %c0_i32 = arith.constant 0 : i32
    %c0_i32_0 = arith.constant 0 : i32
    %c0_i32_1 = arith.constant 0 : i32
    return %c0_i32, %c0_i32_0 : i32, i32
  }
  func.func @transform_4(%arg0: i32) -> i32 {
    %c0_i32 = arith.constant 0 : i32
    %c0_i32_0 = arith.constant 0 : i32
    return %c0_i32 : i32
  }
  func.func @transform_5(%arg0: i32) -> (i32, i32) {
    %c0_i32 = arith.constant 0 : i32
    %c0_i32_0 = arith.constant 0 : i32
    %c0_i32_1 = arith.constant 0 : i32
    return %c0_i32, %c0_i32_0 : i32, i32
  }
  func.func @transform_6(%arg0: i32) -> (i32, i32) {
    %c0_i32 = arith.constant 0 : i32
    %c0_i32_0 = arith.constant 0 : i32
    %c0_i32_1 = arith.constant 0 : i32
    return %c0_i32, %c0_i32_0 : i32, i32
  }
  func.func @transform_7(%arg0: i32) -> (i32, i32) {
    %c0_i32 = arith.constant 0 : i32
    %c0_i32_0 = arith.constant 0 : i32
    %c0_i32_1 = arith.constant 0 : i32
    return %c0_i32, %c0_i32_0 : i32, i32
  }
  func.func @transform_8(%arg0: i32) -> (i32, i32) {
    %c0_i32 = arith.constant 0 : i32
    %c0_i32_0 = arith.constant 0 : i32
    %c0_i32_1 = arith.constant 0 : i32
    return %c0_i32, %c0_i32_0 : i32, i32
  }
  func.func @transform_9(%arg0: i32) -> (i32, i32) {
    %c0_i32 = arith.constant 0 : i32
    %c0_i32_0 = arith.constant 0 : i32
    %c0_i32_1 = arith.constant 0 : i32
    return %c0_i32, %c0_i32_0 : i32, i32
  }
  func.func @transform_10(%arg0: i32) -> (i32, i32) {
    %c0_i32 = arith.constant 0 : i32
    %c0_i32_0 = arith.constant 0 : i32
    %c0_i32_1 = arith.constant 0 : i32
    return %c0_i32, %c0_i32_0 : i32, i32
  }
  func.func @transform_11(%arg0: i32) -> (i32, i32) {
    %c0_i32 = arith.constant 0 : i32
    %c0_i32_0 = arith.constant 0 : i32
    %c0_i32_1 = arith.constant 0 : i32
    return %c0_i32, %c0_i32_0 : i32, i32
  }
  func.func @transform_12(%arg0: i32) -> (i32, i32) {
    %c0_i32 = arith.constant 0 : i32
    %c0_i32_0 = arith.constant 0 : i32
    %c0_i32_1 = arith.constant 0 : i32
    return %c0_i32, %c0_i32_0 : i32, i32
  }
  func.func @transform_13(%arg0: i32) -> (i32, i32) {
    %c0_i32 = arith.constant 0 : i32
    %c0_i32_0 = arith.constant 0 : i32
    %c0_i32_1 = arith.constant 0 : i32
    return %c0_i32, %c0_i32_0 : i32, i32
  }
}

</mosaic_0001>

<bundles_post_ra>
// kernel: tpu_custom_call.1
= control target key start
LH: loop header
LB: loop body
LE: loop exit
PB: predicated region body
PF: predicated region fallthrough
CT: control target
= control target key end

     0   :  { %s2470_s0 = inlined_call_operand.hbm [shape: f32[3], index: 0, kind: input, shape index: {}]   ;;  %s2471_s1 = inlined_call_operand.hbm [shape: f32[3], index: 1, kind: input, shape index: {}]   ;;  %s2472_s2 = inlined_call_operand.<no memory space> [shape: f32[1], index: 2, kind: input, shape index: {}]   ;;  %s2473_s3 = inlined_call_operand.hbm [shape: f32[8,9], index: 3, kind: input, shape index: {}]   ;;  %s2474_s4 = inlined_call_operand.hbm [shape: f32[8], index: 4, kind: input, shape index: {}]   ;;  %s2475_s5 = inlined_call_operand.hbm [shape: f32[8,128], index: 5, kind: input, shape index: {}]   ;;  %s2476_s6 = inlined_call_operand.hbm [shape: f32[8,128], index: 6, kind: input, shape index: {}]   ;;  %s2477_s7 = inlined_call_operand.hbm [shape: f32[8,128], index: 7, kind: input, shape index: {}]   ;;  %s2478_s8 = inlined_call_operand.vmem [shape: f32[8,64], index: 8, kind: input, shape index: {}]   ;;  %s2479_s9 = inlined_call_operand.hbm [shape: bf16[64,128], index: 9, kind: input, shape index: {}]   ;;  %s2480_s10 = inlined_call_operand.vmem [shape: f32[1,128], index: 10, kind: input, shape index: {}]   ;;  %s2481_s11 = inlined_call_operand.hbm [shape: bf16[1024,128], index: 11, kind: input, shape index: {}]   ;;  %s2482_s12 = inlined_call_operand.vmem [shape: f32[1,128], index: 12, kind: input, shape index: {}]   ;;  %s2483_s13 = inlined_call_operand.hbm [shape: bf16[8,128], index: 13, kind: output, shape index: {}]  }
   0x1   :  { %2492 = sst [smem:[#allocation37_spill]] %s2482_s12 }
   0x2   :  { %2493 = sst [smem:[#allocation38_spill]] %s2483_s13 }
   0x3   :  { %19 = vsyncpa [#allocation6], 0 }
   0x4   :  { %20 = vsyncpa [#allocation8], 0 }
   0x5   :  { %21 = vsyncpa [#allocation11], 0 }
   0x6   :  { %22 = vsyncpa [#allocation4], 0 }
   0x7   :  { %23 = vsyncpa [#allocation14], 0 }
   0x8   :  { %24 = vsyncpa [#allocation17], 0  ;;  %s40_s27 = sshll.u32 %s2471_s1, 4  ;;  %s41_s27 = int_to_ptr.hbm [resolvable:$true] %s40_s27 }
   0x9   :  { %25 = vsyncpa [#allocation5], 0  ;;  %s80_s30 = sshll.u32 %s2476_s6, 4  ;;  %s1893_s14 = smov [#allocation7]   ;;  %s81_s30 = int_to_ptr.hbm [resolvable:$true] %s80_s30 }
   0xa   :  { %43 = dma.hbm_to_smem %s41_s27, 16, %s1893_s14, [#allocation8]  }
   0xb   :  { %s1894_s15 = smov [#allocation13]   ;;  %s103_s19 = sshll.u32 %s2479_s9, 4  ;;  %s104_s19 = int_to_ptr.hbm [resolvable:$true] %s103_s19 }
   0xc   :  { %s82_s16 = sshll.u32 %s1894_s15, 4  ;;  %s1895_s20 = smov [#allocation16]   ;;  %s83_s16 = int_to_ptr.vmem [resolvable:$true] %s82_s16 }
   0xd   :  { %85 = dma.hbm_to_vmem [thread:$0]  %s81_s30, 128, %s83_s16, [#allocation14]  }
   0xe   :  { %s105_s1 = sshll.u32 %s1895_s20, 4  ;;  %s31_s23 = sshll.u32 %s2470_s0, 4  ;;  %s106_s1 = int_to_ptr.vmem [resolvable:$true] %s105_s1  ;;  %s32_s23 = int_to_ptr.hbm [resolvable:$true] %s31_s23 }
   0xf   :  { %s1896_s6 = smov 64   ;;  %s1897_s24 = smov 4  }
  0x10   :  { %111 = dma.hbm_to_vmem [thread:$0]  %s104_s19, 512, %s106_s1, [#allocation17], %s1896_s6, %s1896_s6, %s1897_s24  }
  0x11   :  { %s1898_s25 = smov [#allocation3]   ;;  %s51_s27 = sshll.u32 %s2473_s3, 4  ;;  %s52_s27 = int_to_ptr.hbm [resolvable:$true] %s51_s27 }
  0x12   :  { %34 = dma.hbm_to_smem %s32_s23, 16, %s1898_s25, [#allocation6]  }
  0x13   :  { %s60_s30 = sshll.u32 %s2474_s4, 4  ;;  %s1899_s14 = smov [#allocation9]   ;;  %s61_s30 = int_to_ptr.hbm [resolvable:$true] %s60_s30 }
  0x14   :  { %54 = dma.hbm_to_smem %s52_s27, 128, %s1899_s14, [#allocation8]  }
  0x15   :  { %s1900_s0 = smov [#allocation10]   ;;  %s69_s17 = sshll.u32 %s2475_s5, 4  ;;  %s70_s17 = int_to_ptr.hbm [resolvable:$true] %s69_s17 }
  0x16   :  { %63 = dma.hbm_to_smem %s61_s30, 16, %s1900_s0, [#allocation11]  }
  0x17   :  { %s1901_s18 = smov [#allocation12]   ;;  %s91_s1 = sshll.u32 %s2477_s7, 4  ;;  %s92_s1 = int_to_ptr.hbm [resolvable:$true] %s91_s1 }
  0x18   :  { %s71_s19 = sshll.u32 %s1901_s18, 4  ;;  %s1902_s4 = smov [#allocation15]   ;;  %s72_s19 = int_to_ptr.vmem [resolvable:$true] %s71_s19 }
  0x19   :  { %74 = dma.hbm_to_vmem [thread:$0]  %s70_s17, 128, %s72_s19, [#allocation4]  }
  0x1a   :  { %s93_s21 = sshll.u32 %s1902_s4, 4  ;;  %s118_s25 = sshll.u32 %s2481_s11, 4  ;;  %s94_s21 = int_to_ptr.vmem [resolvable:$true] %s93_s21  ;;  %s119_s25 = int_to_ptr.hbm [resolvable:$true] %s118_s25 }
  0x1b   :  { %96 = dma.hbm_to_vmem [thread:$0]  %s92_s1, 128, %s94_s21, [#allocation14]  }
  0x1c   :  { %s1903_s5 = smov [#allocation18]  }
  0x1d   :  { %s120_s9 = sshll.u32 %s1903_s5, 4  ;;  %s121_s9 = int_to_ptr.vmem [resolvable:$true] %s120_s9 }
  0x1e   :  { %126 = dma.hbm_to_vmem [thread:$0]  %s119_s25, 8192, %s121_s9, [#allocation17], %s1896_s6, %s1896_s6, %s1897_s24  }
  0x1f   :  { %1879 = dma.done.wait [#allocation6], 16  }
  0x20   :  { %1880 = vsyncadd [#allocation6], 4294967280 }
  0x21   :  { %1881 = dma.done.wait [#allocation8], 144  }
  0x22   :  { %1882 = vsyncadd [#allocation8], 4294967152 }
  0x23   :  { %1883 = dma.done.wait [#allocation11], 16  }
  0x24   :  { %1884 = vsyncadd [#allocation11], 4294967280 }
  0x25   :  { %1885 = dma.done.wait [#allocation4], 128  }
  0x26   :  { %1886 = vsyncadd [#allocation4], 4294967168 }
  0x27   :  { %1887 = dma.done.wait [#allocation14], 256  }
  0x28   :  { %1888 = vsyncadd [#allocation14], 4294967040 }
  0x29   :  { %1889 = dma.done.wait [#allocation17], 8704  }
  0x2a   :  { %1890 = vsyncadd [#allocation17], 4294958592 }
  0x2b   :  { %165 = sfence }
  0x2c   :  { %v1604_v0 = vld [vmem:[#allocation16 + $0x18] sm:$0xff]  ;;  %s171_s26 = ssub.f32 1.0, %s2472_s2  ;;  %v1603_v1 = vld [vmem:[#allocation16 + $0x10] sm:$0xff]  ;;  %v168_v3 = vld [vmem:[#allocation12] sm:$0xff]  ;;  %v169_v4 = vstv %s2472_s2  ;;  %vm216_vm0 = vcmask 523264   ;;  %s1904_s2 = smov 1   ;;  %v251_v59 = vlaneseq }
  0x2d   :  { %224 = vmatpush.bf16.msra.mxu0 %v1604_v0  ;;  %v172_v2 = vld [vmem:[#allocation13] sm:$0xff]  ;;  %s233_s6 = sld [smem:[#allocation3]]  ;;  %v1602_v5 = vld [vmem:[#allocation16 + $0x8] sm:$0xff]  ;;  %v177_v7 = vld [vmem:[#allocation15] sm:$0xff]  ;;  %v170_v8 = vmul.f32 %v169_v4, %v168_v3 }
  0x2e   :  { %1685 = vtanh.f32 %v172_v2  ;;  %s1263_s24 = sld [smem:[#allocation3 + $0x1]]  ;;  %v174_v6 = vstv %s171_s26  ;;  %v1601_v11 = vld [vmem:[#allocation16] sm:$0xff]  ;;  %v178_v12 = vld [vmem:[%s2478_s8] sm:$0xff]  ;;  %s1905_s8 = smov 127   ;;  %v1612_v23 = vld [vmem:[#allocation18 + $0x38] sm:$0xff]  ;;  %v2109_v60 = vand.u32 127, %v251_v59 }
  0x2f   :  { %s1264_s27 = sld [smem:[#allocation7 + $0x1]]  ;;  %v179_v19 = vpack.c.bf16 %v178_v12, %v178_v12  ;;  %v1620_v24 = vld [vmem:[#allocation18 + $0x78] sm:$0xff]  ;;  %1117 = vmatpush.bf16.msra.mxu1 %v1612_v23  ;;  %v1611_v27 = vld [vmem:[#allocation18 + $0x30] sm:$0xff]  ;;  %v1610_v31 = vld [vmem:[#allocation18 + $0x28] sm:$0xff] }
  0x30   :  { %s236_s30 = sld [smem:[#allocation7]]  ;;  %v1628_v25 = vld [vmem:[#allocation18 + $0xb8] sm:$0xff]  ;;  %1130 = vmatpush.bf16.msra.mxu2 %v1620_v24  ;;  %v1619_v28 = vld [vmem:[#allocation18 + $0x70] sm:$0xff]  ;;  %v1618_v32 = vld [vmem:[#allocation18 + $0x68] sm:$0xff]  ;;  %vm253_vm1 = vcmp.eq.s32.totalorder %v2109_v60, 0  ;;  %vm254_vm2 = vcmp.eq.s32.totalorder %v2109_v60, 127 }
  0x31   :  { %225 = vmatpush.bf16.msra.mxu0 %v1603_v1  ;;  %v1636_v26 = vld [vmem:[#allocation18 + $0xf8] sm:$0xff]  ;;  %1143 = vmatpush.bf16.msra.mxu3 %v1628_v25  ;;  %v1627_v29 = vld [vmem:[#allocation18 + $0xb0] sm:$0xff]  ;;  %v1626_v33 = vld [vmem:[#allocation18 + $0xa8] sm:$0xff]  ;;  %s2031_s15 = sld [smem:[#allocation3 + $0x2]] }
  0x32   :  { %v1635_v30 = vld [vmem:[#allocation18 + $0xf0] sm:$0xff]  ;;  %v1634_v34 = vld [vmem:[#allocation18 + $0xe8] sm:$0xff]  ;;  %v1609_v35 = vld [vmem:[#allocation18 + $0x20] sm:$0xff]  ;;  %s1266_s16 = sld [smem:[#allocation7 + $0x2]] }
  0x33   :  { %v234_v16 = vstv %s233_s6  ;;  %1118 = vmatpush.bf16.msra.mxu1 %v1611_v27  ;;  %v1617_v36 = vld [vmem:[#allocation18 + $0x60] sm:$0xff]  ;;  %v1683_v39 = vld [vmem:[%s2480_s10] ss:$0 sm:$0xff]  ;;  %v1608_v40 = vld [vmem:[#allocation18 + $0x18] sm:$0xff]  ;;  %s2043_s10 = sld [smem:[#allocation9 + $0x7]] }
  0x34   :  { %v1686_v9 = vpop.eup %1685  ;;  %v240_v10 = vstv %s1263_s24  ;;  %1131 = vmatpush.bf16.msra.mxu2 %v1619_v28  ;;  %v1625_v37 = vld [vmem:[#allocation18 + $0xa0] sm:$0xff]  ;;  %v1616_v41 = vld [vmem:[#allocation18 + $0x58] sm:$0xff]  ;;  %v1607_v47 = vld [vmem:[#allocation18 + $0x10] sm:$0xff]  ;;  %s2045_s19 = sld [smem:[#allocation9 + $0x87]] }
  0x35   :  { %226 = vmatpush.bf16.msra.mxu0 %v1602_v5  ;;  %v175_v13 = vmul.f32 %v1686_v9, %v174_v6  ;;  %v241_v14 = vmul.f32 %v240_v10, %v177_v7  ;;  %v243_v15 = vstv %s1264_s27  ;;  %1144 = vmatpush.bf16.msra.mxu3 %v1627_v29  ;;  %v1633_v38 = vld [vmem:[#allocation18 + $0xe0] sm:$0xff]  ;;  %v1624_v42 = vld [vmem:[#allocation18 + $0x98] sm:$0xff]  ;;  %v1615_v48 = vld [vmem:[#allocation18 + $0x50] sm:$0xff]  ;;  %s2047_s20 = sld [smem:[#allocation9 + $0x107]] }
  0x36   :  { %v237_v20 = vstv %s236_s30  ;;  %v1632_v43 = vld [vmem:[#allocation18 + $0xd8] sm:$0xff]  ;;  %v1623_v50 = vld [vmem:[#allocation18 + $0x90] sm:$0xff]  ;;  %v1606_v54 = vld [vmem:[#allocation18 + $0x8] sm:$0xff]  ;;  %s2049_s3 = sld [smem:[#allocation9 + $0x187]] }
  0x37   :  { %v176_v17 = vadd.f32 %v175_v13, %v170_v8  ;;  %v2019_v18 = vadd.f32 %v243_v15, %v241_v14  ;;  %1119 = vmatpush.bf16.msra.mxu1 %v1610_v31  ;;  %v246_v45 = vstv %s2031_s15  ;;  %v1631_v51 = vld [vmem:[#allocation18 + $0xd0] sm:$0xff]  ;;  %v1614_v55 = vld [vmem:[#allocation18 + $0x48] sm:$0xff]  ;;  %s2051_s1 = sld [smem:[#allocation9 + $0x207]]  ;;  %v1613_v23 = vld [vmem:[#allocation18 + $0x40] sm:$0xff] }
  0x38   :  { %1132 = vmatpush.bf16.msra.mxu2 %v1618_v32  ;;  %v249_v49 = vstv %s1266_s16  ;;  %v1622_v56 = vld [vmem:[#allocation18 + $0x88] sm:$0xff]  ;;  %s2053_s4 = sld [smem:[#allocation9 + $0x287]]  ;;  %v1621_v24 = vld [vmem:[#allocation18 + $0x80] sm:$0xff]  ;;  %v1652_v31 = vld [vmem:[#allocation18 + $0x178] sm:$0xff] }
  0x39   :  { %227 = vmatpush.bf16.msra.mxu0 %v1601_v11  ;;  %v235_v21 = vmul.f32 %v234_v16, %v176_v17  ;;  %261 = vrot.lane.b32.xlu1 %v2019_v18, %s1904_s2  ;;  %v1630_v57 = vld [vmem:[#allocation18 + $0xc8] sm:$0xff]  ;;  %2494 = sst [smem:[#allocation27_spill]] %s2043_s10  ;;  %v305_v62 = vstv %s2043_s10  ;;  %v1629_v29 = vld [vmem:[#allocation18 + $0xc0] sm:$0xff] }
  0x3a   :  { %1145 = vmatpush.bf16.msra.mxu3 %v1626_v33  ;;  %s2055_s21 = sld [smem:[#allocation9]]  ;;  %v345_v63 = vstv %s2045_s19 }
  0x3b   :  { %v2023_v22 = vadd.f32 %v237_v20, %v235_v21  ;;  %1120 = vmatpush.bf16.msra.mxu1 %v1609_v35  ;;  %2495 = sst [smem:[#allocation28_spill]] %s2047_s20  ;;  %v385_v1 = vstv %s2047_s20  ;;  %v1605_v21 = vld [vmem:[#allocation18] sm:$0xff]  ;;  %v1660_v35 = vld [vmem:[#allocation18 + $0x1b8] sm:$0xff] }
  0x3c   :  { %1262 = vmatmul.msk.bf16.vlgmr.msra.gmra.mxu0 %vm216_vm0, %v179_v19  ;;  %1133 = vmatpush.bf16.msra.mxu2 %v1617_v36  ;;  %2496 = sst [smem:[#allocation29_spill]] %s2049_s3  ;;  %v425_v2 = vstv %s2049_s3  ;;  %v1668_v36 = vld [vmem:[#allocation18 + $0x1f8] sm:$0xff] }
  0x3d   :  { %255 = vrot.lane.b32.xlu0 %v2023_v22, %s1904_s2  ;;  %1156 = vmatpush.bf16.msrb.mxu0 %v1636_v26  ;;  %2497 = sst [smem:[#allocation30_spill]] %s2051_s1  ;;  %v465_v3 = vstv %s2051_s1 }
  0x3e   :  { %1146 = vmatpush.bf16.msra.mxu3 %v1625_v37  ;;  %2498 = sst [smem:[#allocation31_spill]] %s2053_s4 }
  0x3f   :  { %1121 = vmatpush.bf16.msra.mxu1 %v1608_v40  ;;  %s2057_s22 = sld [smem:[#allocation9 + $0x80]] }
  0x40   :  { %1134 = vmatpush.bf16.msra.mxu2 %v1616_v41  ;;  %s2059_s23 = sld [smem:[#allocation9 + $0x100]]  ;;  %v277_v0 = vstv %s2055_s21 }
  0x41   :  { %264 = vrot.lane.b32.xlu1 %v2019_v18, %s1905_s8  ;;  %1157 = vmatpush.bf16.msrb.mxu0 %v1635_v30  ;;  %s2061_s25 = sld [smem:[#allocation10 + $0x3]]  ;;  %v1644_v30 = vld [vmem:[#allocation18 + $0x138] sm:$0xff] }
  0x42   :  { %1147 = vmatpush.bf16.msra.mxu3 %v1624_v42  ;;  %s2063_s5 = sld [smem:[#allocation9 + $0x180]] }
  0x43   :  { %1122 = vmatpush.bf16.msra.mxu1 %v1607_v47  ;;  %s2065_s9 = sld [smem:[#allocation10 + $0x4]] }
  0x44   :  { %1135 = vmatpush.bf16.msra.mxu2 %v1615_v48  ;;  %s2067_s7 = sld [smem:[#allocation9 + $0x200]] }
  0x45   :  { %258 = vrot.lane.b32.xlu0 %v2023_v22, %s1905_s8  ;;  %1158 = vmatpush.bf16.msrb.mxu0 %v1634_v34  ;;  %s2069_s11 = sld [smem:[#allocation10 + $0x5]]  ;;  %v317_v4 = vstv %s2057_s22 }
  0x46   :  { %1148 = vmatpush.bf16.msra.mxu3 %v1623_v50  ;;  %s2071_s26 = sld [smem:[#allocation9 + $0x280]]  ;;  %v357_v5 = vstv %s2059_s23  ;;  %v1659_v50 = vld [vmem:[#allocation18 + $0x1b0] sm:$0xff] }
  0x47   :  { %1123 = vmatpush.bf16.msra.mxu1 %v1606_v54  ;;  %s2073_s6 = sld [smem:[#allocation10 + $0x6]]  ;;  %v394_v6 = vstv %s2061_s25 }
  0x48   :  { %1136 = vmatpush.bf16.msra.mxu2 %v1614_v55  ;;  %s2075_s24 = sld [smem:[#allocation9 + $0x300]]  ;;  %v397_v7 = vstv %s2063_s5 }
  0x49   :  { %1159 = vmatpush.bf16.msrb.mxu0 %v1633_v38  ;;  %s2077_s27 = sld [smem:[#allocation10 + $0x7]]  ;;  %v434_v8 = vstv %s2065_s9 }
  0x4a   :  { %1149 = vmatpush.bf16.msra.mxu3 %v1622_v56  ;;  %s2079_s28 = sld [smem:[#allocation9 + $0x380]]  ;;  %v437_v9 = vstv %s2067_s7 }
  0x4b   :  { %s2081_s29 = sld [smem:[#allocation9 + $0x183]]  ;;  %v474_v10 = vstv %s2069_s11  ;;  %1124 = vmatpush.bf16.msra.mxu1 %v1605_v21  ;;  %v1642_v21 = vld [vmem:[#allocation18 + $0x128] sm:$0xff] }
  0x4c   :  { %s2083_s30 = sld [smem:[#allocation9 + $0x203]]  ;;  %v477_v12 = vstv %s2071_s26  ;;  %1137 = vmatpush.bf16.msra.mxu2 %v1613_v23  ;;  %v1650_v23 = vld [vmem:[#allocation18 + $0x168] sm:$0xff] }
  0x4d   :  { %1160 = vmatpush.bf16.msrb.mxu0 %v1632_v43  ;;  %s2085_s14 = sld [smem:[#allocation9 + $0x283]]  ;;  %v514_v16 = vstv %s2073_s6  ;;  %v1643_v43 = vld [vmem:[#allocation18 + $0x130] sm:$0xff] }
  0x4e   :  { %s2087_s0 = sld [smem:[#allocation9 + $0x303]]  ;;  %v517_v25 = vstv %s2075_s24  ;;  %1150 = vmatpush.bf16.msra.mxu3 %v1621_v24  ;;  %v1658_v24 = vld [vmem:[#allocation18 + $0x1a8] sm:$0xff] }
  0x4f   :  { %s2093_s15 = sld [smem:[#allocation9 + $0x202]]  ;;  %v554_v26 = vstv %s2077_s27  ;;  %1169 = vmatpush.bf16.msrb.mxu1 %v1644_v30 }
  0x50   :  { %s2095_s16 = sld [smem:[#allocation9 + $0x282]]  ;;  %v557_v27 = vstv %s2079_s28  ;;  %1182 = vmatpush.bf16.msrb.mxu2 %v1652_v31 }
  0x51   :  { %1161 = vmatpush.bf16.msrb.mxu0 %v1631_v51  ;;  %s2097_s17 = sld [smem:[#allocation9 + $0x302]]  ;;  %v409_v13 = vstv %s2081_s29  ;;  %v1667_v51 = vld [vmem:[#allocation18 + $0x1f0] sm:$0xff] }
  0x52   :  { %s2099_s18 = sld [smem:[#allocation9 + $0x381]]  ;;  %v449_v14 = vstv %s2083_s30  ;;  %1195 = vmatpush.bf16.msrb.mxu3 %v1660_v35 }
  0x53   :  { %s2101_s13 = sld [smem:[#allocation9 + $0x382]]  ;;  %v489_v19 = vstv %s2085_s14  ;;  %1170 = vmatpush.bf16.msrb.mxu1 %v1643_v43 }
  0x54   :  { %s2103_s12 = sld [smem:[#allocation10]]  ;;  %v529_v20 = vstv %s2087_s0 }
  0x55   :  { %1162 = vmatpush.bf16.msrb.mxu0 %v1630_v57  ;;  %2499 = sst [smem:[#allocation32_spill]] %s2093_s15 }
  0x56   :  { %2500 = sst [smem:[#allocation33_spill]] %s2095_s16  ;;  %1196 = vmatpush.bf16.msrb.mxu3 %v1659_v50  ;;  %v1665_v50 = vld [vmem:[#allocation18 + $0x1e0] sm:$0xff] }
  0x57   :  { %2501 = sst [smem:[#allocation34_spill]] %s2097_s17  ;;  %1171 = vmatpush.bf16.msrb.mxu1 %v1642_v21  ;;  %v1640_v21 = vld [vmem:[#allocation18 + $0x118] sm:$0xff] }
  0x58   :  { %2502 = sst [smem:[#allocation35_spill]] %s2099_s18 }
  0x59   :  { %2503 = sst [smem:[#allocation36_spill]] %s2101_s13  ;;  %1163 = vmatpush.bf16.msrb.mxu0 %v1629_v29 }
  0x5a   :  { %s2105_s4 = sld [smem:[#allocation9 + $0x1]]  ;;  %1197 = vmatpush.bf16.msrb.mxu3 %v1658_v24 }
  0x5b   :  { %s2107_s15 = sld [smem:[#allocation9 + $0x2]] }
  0x5c   :  { %s2111_s17 = sld [smem:[#allocation10 + $0x1]] }
  0x5d   :  { %s2113_s18 = sld [smem:[#allocation9 + $0x3]]  ;;  %1208 = vmatpush.bf16.msra.mxu0 %v1668_v36 }
  0x5e   :  { %s2116_s13 = sld [smem:[#allocation9 + $0x81]] }
  0x5f   :  { %s2120_s16 = sld [smem:[#allocation9 + $0x4]] }
  0x60   :  { %s2129_s10 = sld [smem:[#allocation9 + $0x82]] }
  0x61   :  { %s2135_s21 = sld [smem:[#allocation10 + $0x2]]  ;;  %1209 = vmatpush.bf16.msra.mxu0 %v1667_v51 }
  0x62   :  { %s2144_s22 = sld [smem:[#allocation9 + $0x101]] }
  0x63   :  { %s2153_s1 = sld [smem:[#allocation9 + $0x5]]  ;;  %v289_v43 = vstv %s2113_s18 }
  0x64   :  { %s2504_s29 = sld [smem:[#allocation32_spill]]  ;;  %v321_v54 = vstv %s2116_s13 }
  0x65   :  { %s2159_s30 = sld [smem:[#allocation9 + $0x83]] }
  0x66   :  { %s2169_s24 = sld [smem:[#allocation9 + $0x181]] }
  0x67   :  { %s2505_s28 = sld [smem:[#allocation33_spill]] }
  0x68   :  { %s2506_s14 = sld [smem:[#allocation34_spill]] }
  0x69   :  { %s2179_s0 = sld [smem:[#allocation9 + $0x102]] }
  0x6a   :  { %v445_v40 = vstv %s2504_s29  ;;  %s2187_s3 = sld [smem:[#allocation9 + $0x6]] }
  0x6b   :  { %s2193_s20 = sld [smem:[#allocation9 + $0x84]]  ;;  %v329_v51 = vstv %s2159_s30 }
  0x6c   :  { %s2208_s13 = sld [smem:[#allocation9 + $0x103]] }
  0x6d   :  { %v485_v47 = vstv %s2505_s28  ;;  %s2508_s23 = sld [smem:[#allocation36_spill]] }
  0x6e   :  { %v525_v48 = vstv %s2506_s14  ;;  %s2225_s5 = sld [smem:[#allocation9 + $0x8]] }
  0x6f   :  { %s2231_s7 = sld [smem:[#allocation9 + $0x201]]  ;;  %v365_v35 = vstv %s2179_s0 }
  0x70   :  { %s2237_s26 = sld [smem:[#allocation9 + $0x104]] }
  0x71   :  { %s2252_s27 = sld [smem:[#allocation9 + $0x281]] }
  0x72   :  { %s2263_s25 = sld [smem:[#allocation9 + $0x184]] }
  0x73   :  { %v565_v36 = vstv %s2508_s23  ;;  %s2267_s9 = sld [smem:[#allocation9 + $0x105]] }
  0x74   :  { %s2272_s11 = sld [smem:[#allocation9 + $0x301]] }
  0x75   :  { %s2283_s6 = sld [smem:[#allocation9 + $0x106]]  ;;  %v441_v24 = vstv %s2231_s7 }
  0x76   :  { %s2333_s18 = sld [smem:[#allocation9 + $0x206]] }
  0x77   :  { %s2343_s30 = sld [smem:[#allocation9 + $0x285]] }
  0x78   :  { %s2363_s28 = sld [smem:[#allocation9 + $0x305]] }
  0x79   :  { %s2372_s14 = sld [smem:[#allocation9 + $0x188]] }
  0x7a   :  { %s2377_s0 = sld [smem:[#allocation9 + $0x286]] }
  0x7b   :  { %s2418_s23 = sld [smem:[#allocation9 + $0x387]] }
  0x7c   :  { %s2428_s7 = sld [smem:[#allocation9 + $0x288]] }
  0xab   :  { %v262_v11 = vpop.permute.xlu1 %261 }
  0xac   :  { %v2142_v15 = vsel %vm253_vm1, 0.0, %v262_v11 }
  0xad   :  { %v2162_v32 = vmul.f32 %v409_v13, %v2142_v15  ;;  %v2165_v33 = vmul.f32 %v449_v14, %v2142_v15  ;;  %v2173_v38 = vmul.f32 %v489_v19, %v2142_v15  ;;  %v322_v13 = vmul.f32 %v321_v54, %v2023_v22 }
  0xaf   :  { %v256_v61 = vpop.permute.xlu0 %255 }
  0xb0   :  { %v2149_v17 = vsel %vm253_vm1, 0.0, %v256_v61 }
  0xb1   :  { %v278_v37 = vmul.f32 %v277_v0, %v2149_v17  ;;  %v318_v41 = vmul.f32 %v317_v4, %v2149_v17  ;;  %v358_v55 = vmul.f32 %v357_v5, %v2149_v17  ;;  %v398_v56 = vmul.f32 %v397_v7, %v2149_v17 }
  0xb2   :  { %v558_v57 = vmul.f32 %v557_v27, %v2149_v17  ;;  %v354_v0 = vstv %s2135_s21  ;;  %v361_v4 = vstv %s2144_s22  ;;  %v285_v7 = vstv %s2107_s15  ;;  %s2510_s21 = sld [smem:[#allocation31_spill]] }
  0xb3   :  { %v438_v14 = vmul.f32 %v437_v9, %v2149_v17  ;;  %v478_v19 = vmul.f32 %v477_v12, %v2149_v17  ;;  %v325_v27 = vstv %s2129_s10  ;;  %v1666_v9 = vld [vmem:[#allocation18 + $0x1e8] sm:$0xff]  ;;  %v359_v29 = vadd.f32 %v358_v55, %v354_v0  ;;  %s2242_s10 = sld [smem:[#allocation9 + $0x88]] }
  0xb4   :  { %v362_v30 = vmul.f32 %v361_v4, %v2023_v22  ;;  %v401_v12 = vstv %s2169_s24  ;;  %1210 = vmatpush.bf16.msra.mxu0 %v1666_v9  ;;  %v330_v0 = vmul.f32 %v329_v51, %v2142_v15  ;;  %s2337_s22 = sld [smem:[#allocation9 + $0x284]] }
  0xb5   :  { %v2256_v54 = vadd.f32 %v478_v19, %v474_v10  ;;  %s2349_s24 = sld [smem:[#allocation9 + $0x304]] }
  0xb8   :  { %1211 = vmatpush.bf16.msra.mxu0 %v1665_v50 }
  0xb9   :  { %v229_v44 = vpop.f32.mrf.mxu0 }
  0xba   :  { %v230_v46 = vadd.f32 %v1683_v39, %v229_v44  ;;  %v2176_v39 = vmul.f32 %v529_v20, %v2142_v15  ;;  %v1651_v44 = vld [vmem:[#allocation18 + $0x170] sm:$0xff]  ;;  %v518_v20 = vmul.f32 %v517_v25, %v2149_v17  ;;  %v559_v17 = vadd.f32 %v558_v57, %v554_v26 }
  0xbb   :  { %1183 = vmatpush.bf16.msrb.mxu2 %v1651_v44  ;;  %v399_v26 = vadd.f32 %v398_v56, %v394_v6  ;;  %v363_v6 = vadd.f32 %v362_v30, %v359_v29  ;;  %v373_v29 = vstv %s2237_s26  ;;  %s2437_s26 = sld [smem:[#allocation9 + $0x308]] }
  0xbc   :  { %v247_v52 = vmul.f32 %v246_v45, %v230_v46  ;;  %v274_v45 = vstv %s2103_s12  ;;  %v281_v46 = vstv %s2105_s4  ;;  %s2203_s12 = sld [smem:[#allocation9 + $0x85]]  ;;  %v2260_v55 = vadd.f32 %v518_v20, %v514_v16 }
  0xbd   :  { %v279_v59 = vadd.f32 %v278_v37, %v274_v45  ;;  %v282_v61 = vmul.f32 %v281_v46, %v2023_v22  ;;  %s2216_s4 = sld [smem:[#allocation9 + $0x86]]  ;;  %v1641_v37 = vld [vmem:[#allocation18 + $0x120] sm:$0xff]  ;;  %v2248_v46 = vadd.f32 %v438_v14, %v434_v8  ;;  %v293_v16 = vstv %s2120_s16 }
  0xbe   :  { %v2037_v53 = vadd.f32 %v249_v49, %v247_v52  ;;  %v259_v49 = vpop.permute.xlu0 %258  ;;  %v314_v52 = vstv %s2111_s17  ;;  %1172 = vmatpush.bf16.msrb.mxu1 %v1641_v37  ;;  %v294_v9 = vmul.f32 %v293_v16, %v2019_v18  ;;  %s2310_s16 = sld [smem:[#allocation9 + $0x205]]  ;;  %v442_v37 = vmul.f32 %v441_v24, %v2023_v22  ;;  %v1662_v16 = vld [vmem:[#allocation18 + $0x1c8] sm:$0xff] }
  0xbf   :  { %v2212_v5 = vsel %vm254_vm2, 0.0, %v259_v49  ;;  %v319_v11 = vadd.f32 %v318_v41, %v314_v52  ;;  %v283_v25 = vadd.f32 %v282_v61, %v279_v59  ;;  %1184 = vmatpush.bf16.msrb.mxu2 %v1650_v23  ;;  %v1649_v41 = vld [vmem:[#allocation18 + $0x160] sm:$0xff]  ;;  %v402_v52 = vmul.f32 %v401_v12, %v2023_v22  ;;  %v1656_v23 = vld [vmem:[#allocation18 + $0x198] sm:$0xff]  ;;  %s2313_s17 = sld [smem:[#allocation9 + $0x108]] }
  0xc0   :  { %267 = vrot.lane.b32.xlu2 %v2037_v53, %s1904_s2  ;;  %s2089_s2 = sld [smem:[#allocation9 + $0x383]]  ;;  %v286_v31 = vmul.f32 %v285_v7, %v2212_v5  ;;  %v326_v45 = vmul.f32 %v325_v27, %v2212_v5  ;;  %v1657_v49 = vld [vmem:[#allocation18 + $0x1a0] sm:$0xff]  ;;  %v366_v8 = vmul.f32 %v365_v35, %v2212_v5  ;;  %v369_v59 = vstv %s2208_s13  ;;  %v1655_v35 = vld [vmem:[#allocation18 + $0x190] sm:$0xff] }
  0xc1   :  { %v231_v58 = vpop.f32.mrf.mxu0  ;;  %v323_v44 = vadd.f32 %v322_v13, %v319_v11  ;;  %v566_v10 = vmul.f32 %v565_v36, %v2212_v5  ;;  %v2280_v7 = vmul.f32 %v445_v40, %v2212_v5  ;;  %v265_v11 = vpop.permute.xlu1 %264  ;;  %1198 = vmatpush.bf16.msrb.mxu3 %v1657_v49  ;;  %v333_v13 = vstv %s2193_s20  ;;  %v1648_v40 = vld [vmem:[#allocation18 + $0x158] sm:$0xff]  ;;  %s2301_s20 = sld [smem:[#allocation9 + $0x204]]  ;;  %v1663_v36 = vld [vmem:[#allocation18 + $0x1d0] sm:$0xff] }
  0xc2   :  { %v287_v57 = vadd.f32 %v286_v31, %v283_v25  ;;  %v403_v14 = vadd.f32 %v402_v52, %v399_v26  ;;  %v2288_v19 = vmul.f32 %v485_v47, %v2212_v5  ;;  %v367_v20 = vadd.f32 %v366_v8, %v363_v6  ;;  %v1664_v47 = vld [vmem:[#allocation18 + $0x1d8] sm:$0xff]  ;;  %1173 = vmatpush.bf16.msrb.mxu1 %v1640_v21  ;;  %v1638_v8 = vld [vmem:[#allocation18 + $0x108] sm:$0xff]  ;;  %s2407_s13 = sld [smem:[#allocation9 + $0x386]] }
  0xc3   :  { %1185 = vmatpush.bf16.msrb.mxu2 %v1649_v41  ;;  %v327_v61 = vadd.f32 %v326_v45, %v323_v44  ;;  %v2297_v27 = vmul.f32 %v525_v48, %v2212_v5  ;;  %v1639_v48 = vld [vmem:[#allocation18 + $0x110] sm:$0xff]  ;;  %v297_v25 = vstv %s2153_s1  ;;  %1212 = vmatpush.bf16.msra.mxu0 %v1664_v47  ;;  %v481_v41 = vstv %s2252_s27  ;;  %s2324_s1 = sld [smem:[#allocation9 + $0x186]]  ;;  %v1661_v47 = vld [vmem:[#allocation18 + $0x1c0] sm:$0xff] }
  0xc4   :  { %v374_v45 = vmul.f32 %v373_v29, %v2019_v18  ;;  %v413_v26 = vstv %s2263_s25  ;;  %v337_v50 = vstv %s2203_s12  ;;  %v2330_v51 = vmul.f32 %v345_v63, %v2037_v53  ;;  %v1653_v29 = vld [vmem:[#allocation18 + $0x180] sm:$0xff]  ;;  %s2391_s12 = sld [smem:[#allocation9 + $0x385]] }
  0xc5   :  { %v331_v12 = vadd.f32 %v330_v0, %v327_v61  ;;  %1199 = vmatpush.bf16.msrb.mxu3 %v1656_v23  ;;  %v377_v52 = vstv %s2267_s9  ;;  %v443_v61 = vadd.f32 %v442_v37, %v2248_v46  ;;  %v505_v0 = vstv %s2510_s21  ;;  %v1645_v23 = vld [vmem:[#allocation18 + $0x140] sm:$0xff] }
  0xc6   :  { %v569_v28 = vstv %s2089_s2  ;;  %s2507_s2 = sld [smem:[#allocation35_spill]]  ;;  %1174 = vmatpush.bf16.msrb.mxu1 %v1639_v48  ;;  %v2360_v46 = vmul.f32 %v425_v2, %v2037_v53  ;;  %v381_v48 = vstv %s2283_s6  ;;  %s1906_s6 = smov [#allocation19]  }
  0xc7   :  { %v2183_v42 = vmul.f32 %v569_v28, %v2142_v15  ;;  %1186 = vmatpush.bf16.msrb.mxu2 %v1648_v40  ;;  %1213 = vmatpush.bf16.msra.mxu0 %v1663_v36  ;;  %v1637_v40 = vld [vmem:[#allocation18 + $0x100] sm:$0xff]  ;;  %v453_v24 = vstv %s2301_s20 }
  0xc8   :  { %270 = vrot.lane.b32.xlu2 %v2037_v53, %s1905_s8  ;;  %s2091_s8 = sld [smem:[#allocation9 + $0x182]] }
  0xc9   :  { %1200 = vmatpush.bf16.msrb.mxu3 %v1655_v35  ;;  %v461_v35 = vstv %s2333_s18 }
  0xca   :  { %1175 = vmatpush.bf16.msrb.mxu1 %v1638_v8 }
  0xcb   :  { %1214 = vmatpush.bf16.msra.mxu0 %v1662_v16 }
  0xcc   :  { %v561_v58 = vstv %s2507_s2  ;;  %s2385_s2 = sld [smem:[#allocation9 + $0x306]] }
  0xcd   :  { %v562_v28 = vmul.f32 %v561_v58, %v2023_v22  ;;  %v290_v58 = vmul.f32 %v289_v43, %v2142_v15  ;;  %v2320_v43 = vmul.f32 %v305_v62, %v2037_v53 }
  0xce   :  { %v405_v34 = vstv %s2091_s8  ;;  %s2291_s8 = sld [smem:[#allocation9 + $0x185]]  ;;  %1176 = vmatpush.bf16.msrb.mxu1 %v1637_v40 }
  0xcf   :  { %v563_v56 = vadd.f32 %v562_v28, %v559_v17  ;;  %v406_v4 = vmul.f32 %v405_v34, %v2212_v5  ;;  %v370_v34 = vmul.f32 %v369_v59, %v2142_v15  ;;  %v291_v28 = vadd.f32 %v290_v58, %v287_v57  ;;  %v1647_v5 = vld [vmem:[#allocation18 + $0x150] sm:$0xff]  ;;  %1215 = vmatpush.bf16.msra.mxu0 %v1661_v47 }
  0xd0   :  { %v2307_v15 = vsel %vm254_vm2, 0.0, %v265_v11  ;;  %v334_v17 = vmul.f32 %v333_v13, %v2019_v18  ;;  %1187 = vmatpush.bf16.msrb.mxu2 %v1647_v5  ;;  %v482_v57 = vmul.f32 %v481_v41, %v2023_v22  ;;  %v521_v58 = vstv %s2272_s11  ;;  %s2514_s11 = sld [smem:[#allocation37_spill]] }
  0xd1   :  { %v2303_v30 = vadd.f32 %v566_v10, %v563_v56  ;;  %v407_v31 = vadd.f32 %v406_v4, %v403_v14  ;;  %v371_v44 = vadd.f32 %v370_v34, %v367_v20  ;;  %v295_v49 = vadd.f32 %v294_v9, %v291_v28  ;;  %v1646_v56 = vld [vmem:[#allocation18 + $0x148] sm:$0xff] }
  0xd2   :  { %v298_v6 = vmul.f32 %v297_v25, %v2307_v15  ;;  %v335_v62 = vadd.f32 %v334_v17, %v331_v12  ;;  %v414_v59 = vmul.f32 %v413_v26, %v2019_v18  ;;  %v1654_v10 = vld [vmem:[#allocation18 + $0x188] sm:$0xff]  ;;  %v338_v4 = vmul.f32 %v337_v50, %v2307_v15 }
  0xd3   :  { %v411_v63 = vadd.f32 %v2162_v32, %v407_v31  ;;  %v375_v11 = vadd.f32 %v374_v45, %v371_v44  ;;  %v378_v13 = vmul.f32 %v377_v52, %v2307_v15  ;;  %v301_v14 = vstv %s2187_s3  ;;  %s2368_s3 = sld [smem:[#allocation9 + $0x384]]  ;;  %1201 = vmatpush.bf16.msrb.mxu3 %v1654_v10 }
  0xd4   :  { %v417_v32 = vstv %s2291_s8  ;;  %v2355_v20 = vmul.f32 %v385_v1, %v2037_v53  ;;  %v522_v34 = vmul.f32 %v521_v58, %v2023_v22  ;;  %v299_v21 = vadd.f32 %v298_v6, %v295_v49  ;;  %1188 = vmatpush.bf16.msrb.mxu2 %v1646_v56  ;;  %s1229_s8 = sshll.u32 %s1906_s6, 4  ;;  %s1230_s8 = int_to_ptr.vmem [resolvable:$true] %s1229_s8 }
  0xd5   :  { %v457_v28 = vstv %s2310_s16  ;;  %v483_v1 = vadd.f32 %v482_v57, %v2256_v54  ;;  %v341_v9 = vstv %s2216_s4  ;;  %v415_v2 = vadd.f32 %v414_v59, %v411_v63  ;;  %s2413_s4 = sld [smem:[#allocation9 + $0x307]] }
  0xd6   :  { %v418_v22 = vmul.f32 %v417_v32, %v2307_v15  ;;  %v447_v12 = vadd.f32 %v2280_v7, %v443_v61  ;;  %v339_v17 = vadd.f32 %v338_v4, %v335_v62  ;;  %v379_v54 = vadd.f32 %v378_v13, %v375_v11  ;;  %s2515_s16 = sld [smem:[#allocation38_spill]] }
  0xd7   :  { %v421_v5 = vstv %s2324_s1  ;;  %v454_v25 = vmul.f32 %v453_v24, %v2019_v18  ;;  %v2381_v31 = vmul.f32 %v457_v28, %v2307_v15  ;;  %v523_v36 = vadd.f32 %v522_v34, %v2260_v55  ;;  %1202 = vmatpush.bf16.msrb.mxu3 %v1653_v29 }
  0xd8   :  { %v309_v7 = vstv %s2225_s5  ;;  %v349_v41 = vstv %s2242_s10  ;;  %1189 = vmatpush.bf16.msrb.mxu2 %v1645_v23  ;;  %v487_v44 = vadd.f32 %v2288_v19, %v483_v1  ;;  %v493_v45 = vstv %s2337_s22  ;;  %s2420_s5 = sld [smem:[#allocation9 + $0x208]] }
  0xd9   :  { %v389_v49 = vstv %s2313_s17  ;;  %v419_v55 = vadd.f32 %v418_v22, %v415_v2  ;;  %v451_v50 = vadd.f32 %v2165_v33, %v447_v12  ;;  %v494_v8 = vmul.f32 %v493_v45, %v2019_v18  ;;  %s2439_s10 = sld [smem:[#allocation9 + $0x388]] }
  0xda   :  { %v497_v56 = vstv %s2343_s30  ;;  %v527_v57 = vadd.f32 %v2297_v27, %v523_v36  ;;  %v533_v58 = vstv %s2349_s24  ;;  %v491_v33 = vadd.f32 %v2173_v38, %v487_v44 }
  0xdb   :  { %v537_v59 = vstv %s2363_s28  ;;  %v573_v10 = vstv %s2368_s3  ;;  %v429_v11 = vstv %s2372_s14  ;;  %v455_v13 = vadd.f32 %v454_v25, %v451_v50 }
  0xdc   :  { %v498_v32 = vmul.f32 %v497_v56, %v2307_v15  ;;  %v501_v27 = vstv %s2377_s0  ;;  %v531_v38 = vadd.f32 %v2176_v39, %v527_v57  ;;  %v538_v34 = vmul.f32 %v537_v59, %v2307_v15  ;;  %s1231_s17 = sshll.u32 %s2515_s16, 4  ;;  %s1232_s17 = int_to_ptr.hbm [resolvable:$true] %s1231_s17 }
  0xdd   :  { %v574_v40 = vmul.f32 %v573_v10, %v2019_v18  ;;  %v495_v28 = vadd.f32 %v494_v8, %v491_v33  ;;  %v541_v1 = vstv %s2385_s2  ;;  %v585_v8 = vstv %s2418_s23 }
  0xde   :  { %v466_v59 = vmul.f32 %v465_v3, %v2037_v53 }
  0xdf   :  { %v499_v25 = vadd.f32 %v498_v32, %v495_v28 }
 0x11a   :  { %v268_v37 = vpop.permute.xlu2 %267 }
 0x11b   :  { %v2395_v26 = vsel %vm253_vm1, 0.0, %v268_v37 }
 0x11c   :  { %v302_v52 = vmul.f32 %v301_v14, %v2395_v26  ;;  %v342_v19 = vmul.f32 %v341_v9, %v2395_v26  ;;  %v382_v6 = vmul.f32 %v381_v48, %v2395_v26  ;;  %v422_v62 = vmul.f32 %v421_v5, %v2395_v26 }
 0x11d   :  { %v534_v14 = vmul.f32 %v533_v58, %v2019_v18  ;;  %v577_v9 = vstv %s2391_s12  ;;  %v462_v5 = vmul.f32 %v461_v35, %v2395_v26  ;;  %v502_v36 = vmul.f32 %v501_v27, %v2395_v26 }
 0x11e   :  { %v303_v63 = vadd.f32 %v302_v52, %v299_v21  ;;  %v343_v16 = vadd.f32 %v342_v19, %v339_v17  ;;  %v383_v61 = vadd.f32 %v382_v6, %v379_v54  ;;  %v423_v4 = vadd.f32 %v422_v62, %v419_v55 }
 0x11f   :  { %v571_v21 = vadd.f32 %v2183_v42, %v2303_v30  ;;  %v535_v47 = vadd.f32 %v534_v14, %v531_v38  ;;  %v578_v60 = vmul.f32 %v577_v9, %v2307_v15  ;;  %v581_v17 = vstv %s2407_s13 }
 0x120   :  { %v307_v24 = vadd.f32 %v2320_v43, %v303_v63  ;;  %v347_v39 = vadd.f32 %v2330_v51, %v343_v16  ;;  %v387_v22 = vadd.f32 %v2355_v20, %v383_v61  ;;  %v427_v42 = vadd.f32 %v2360_v46, %v423_v4 }
 0x121   :  { %v575_v12 = vadd.f32 %v574_v40, %v571_v21  ;;  %v459_v46 = vadd.f32 %v2381_v31, %v455_v13  ;;  %v539_v44 = vadd.f32 %v538_v34, %v535_v47  ;;  %v542_v45 = vmul.f32 %v541_v1, %v2395_v26 }
 0x122   :  { %v271_v23 = vpop.permute.xlu2 %270  ;;  %v469_v19 = vstv %s2420_s5  ;;  %v509_v6 = vstv %s2428_s7  ;;  %v545_v62 = vstv %s2413_s4  ;;  %v503_v57 = vadd.f32 %v502_v36, %v499_v25 }
 0x123   :  { %v272_v2 = vsel %vm254_vm2, 0.0, %v271_v23  ;;  %v579_v31 = vadd.f32 %v578_v60, %v575_v12  ;;  %v463_v56 = vadd.f32 %v462_v5, %v459_v46  ;;  %v549_v58 = vstv %s2437_s26 }
 0x124   :  { %v310_v18 = vmul.f32 %v309_v7, %v272_v2  ;;  %v350_v30 = vmul.f32 %v349_v41, %v272_v2  ;;  %v390_v43 = vmul.f32 %v389_v49, %v272_v2  ;;  %v430_v29 = vmul.f32 %v429_v11, %v272_v2 }
 0x125   :  { %v582_v49 = vmul.f32 %v581_v17, %v2395_v26  ;;  %v589_v63 = vstv %s2439_s10  ;;  %v543_v33 = vadd.f32 %v542_v45, %v539_v44  ;;  %v470_v10 = vmul.f32 %v469_v19, %v272_v2 }
 0x126   :  { %v311_v54 = vadd.f32 %v310_v18, %v307_v24  ;;  %v351_v51 = vadd.f32 %v350_v30, %v347_v39  ;;  %v391_v48 = vadd.f32 %v390_v43, %v387_v22  ;;  %v431_v20 = vadd.f32 %v430_v29, %v427_v42  ;;  %v1684_v18 = vld [vmem:[%s2514_s11] ss:$0 sm:$0xff] }
 0x127   :  { %v583_v26 = vadd.f32 %v582_v49, %v579_v31  ;;  %v506_v16 = vmul.f32 %v505_v0, %v2037_v53  ;;  %v510_v61 = vmul.f32 %v509_v6, %v272_v2  ;;  %v546_v4 = vmul.f32 %v545_v62, %v2037_v53 }
 0x128   :  { %v312_v37 = vmax.f32 %v311_v54, 0.0  ;;  %v352_v7 = vmax.f32 %v351_v51, 0.0  ;;  %v392_v15 = vmax.f32 %v391_v48, 0.0  ;;  %v432_v41 = vmax.f32 %v431_v20, 0.0 }
 0x129   :  { %v550_v11 = vmul.f32 %v549_v58, %v272_v2  ;;  %v586_v13 = vmul.f32 %v585_v8, %v2037_v53  ;;  %v590_v32 = vmul.f32 %v589_v63, %v272_v2  ;;  %v467_v27 = vadd.f32 %v466_v59, %v463_v56 }
 0x12a   :  { %v593_v55 = vpack.c.bf16 %v312_v37, %v312_v37  ;;  %v594_v35 = vpack.c.bf16 %v352_v7, %v352_v7  ;;  %v595_v50 = vpack.c.bf16 %v392_v15, %v392_v15  ;;  %v596_v52 = vpack.c.bf16 %v432_v41, %v432_v41 }
 0x12b   :  { %v507_v14 = vadd.f32 %v506_v16, %v503_v57  ;;  %v547_v38 = vadd.f32 %v546_v4, %v543_v33  ;;  %v587_v34 = vadd.f32 %v586_v13, %v583_v26  ;;  %v471_v21 = vadd.f32 %v470_v10, %v467_v27 }
 0x12c   :  { %1125 = vmatmul.bf16.vlgmr.msra.gmra.mxu1 %v593_v55  ;;  %1138 = vmatmul.bf16.vlgmr.msra.gmra.mxu2 %v594_v35 }
 0x12d   :  { %1151 = vmatmul.bf16.vlgmr.msra.gmra.mxu3 %v595_v50  ;;  %1164 = vmatmul.bf16.vlgmr.msrb.gmra.mxu0 %v596_v52  ;;  %v511_v40 = vadd.f32 %v510_v61, %v507_v14  ;;  %v551_v23 = vadd.f32 %v550_v11, %v547_v38  ;;  %v591_v24 = vadd.f32 %v590_v32, %v587_v34  ;;  %v472_v3 = vmax.f32 %v471_v21, 0.0 }
 0x12f   :  { %v512_v28 = vmax.f32 %v511_v40, 0.0  ;;  %v552_v1 = vmax.f32 %v551_v23, 0.0  ;;  %v592_v9 = vmax.f32 %v591_v24, 0.0  ;;  %v597_v0 = vpack.c.bf16 %v472_v3, %v472_v3 }
 0x131   :  { %v598_v39 = vpack.c.bf16 %v512_v28, %v512_v28  ;;  %v599_v22 = vpack.c.bf16 %v552_v1, %v552_v1  ;;  %v600_v42 = vpack.c.bf16 %v592_v9, %v592_v9 }
 0x13c   :  { %1177 = vmatmul.bf16.vlgmr.msrb.gmra.mxu1 %v597_v0  ;;  %1190 = vmatmul.bf16.vlgmr.msrb.gmra.mxu2 %v598_v39 }
 0x13d   :  { %1203 = vmatmul.bf16.vlgmr.msrb.gmra.mxu3 %v599_v22  ;;  %1216 = vmatmul.bf16.vlgmr.msra.gmra.mxu0 %v600_v42 }
 0x1a9   :  { %v1126_v53 = vpop.f32.mrf.mxu1 }
 0x1aa   :  { %v1165_v2 = vpop.f32.mrf.mxu0  ;;  %v1127_v47 = vadd.f32 %v1684_v18, %v1126_v53 }
 0x1af   :  { %v1139_v30 = vpop.f32.mrf.mxu2 }
 0x1b0   :  { %v1152_v43 = vpop.f32.mrf.mxu3  ;;  %v1140_v60 = vadd.f32 %v1139_v30, %v1127_v47 }
 0x1b1   :  { %v1128_v29 = vpop.f32.mrf.mxu1 }
 0x1b2   :  { %v1167_v12 = vpop.f32.mrf.mxu0  ;;  %v1153_v54 = vadd.f32 %v1152_v43, %v1140_v60 }
 0x1b4   :  { %v1166_v46 = vadd.f32 %v1165_v2, %v1153_v54 }
 0x1b7   :  { %v1141_v17 = vpop.f32.mrf.mxu2 }
 0x1b8   :  { %v1154_v51 = vpop.f32.mrf.mxu3 }
 0x1b9   :  { %v1178_v48 = vpop.f32.mrf.mxu1 }
 0x1ba   :  { %v1217_v20 = vpop.f32.mrf.mxu0  ;;  %v1179_v5 = vadd.f32 %v1178_v48, %v1166_v46 }
 0x1bf   :  { %v1191_v25 = vpop.f32.mrf.mxu2 }
 0x1c0   :  { %v1192_v36 = vadd.f32 %v1191_v25, %v1179_v5  ;;  %v1204_v37 = vpop.f32.mrf.mxu3 }
 0x1c1   :  { %v1180_v7 = vpop.f32.mrf.mxu1 }
 0x1c2   :  { %v1205_v15 = vadd.f32 %v1204_v37, %v1192_v36  ;;  %v1219_v41 = vpop.f32.mrf.mxu0 }
 0x1c4   :  { %v1218_v44 = vadd.f32 %v1217_v20, %v1205_v15 }
 0x1c6   :  { %v1221_v45 = vmax.f32 %v1218_v44, 0.0 }
 0x1c7   :  { %v1193_v31 = vpop.f32.mrf.mxu2 }
 0x1c8   :  { %v1206_v49 = vpop.f32.mrf.mxu3  ;;  %v1222_v55 = vpack.c.bf16 %v1221_v45, %v1221_v45 }
 0x1ca   :  { %1223 = vst [vmem:[#allocation19] sm:$0xf] %v1222_v55 }
 0x1cb   :  { %1234 = dma.vmem_to_hbm [thread:$0]  %s1230_s8, 64, %s1232_s17, [#allocation5]  }
 0x1cc   :  { %1891 = dma.done.wait [#allocation5], 64  }
 0x1cd   :  { %1892 = vsyncadd [#allocation5], 4294967232 }
 0x1ce   :  { %1239 = vsyncpa [#allocation4], 1 }
 0x1cf   :  { %1240 = vsyncpa [#allocation14], 1 }
 0x1d0   :  { %1241 = vsyncpa [#allocation17], 1 }
 0x1d1   :  { %1242 = vsyncpa [#allocation5], 1 }
 0x1d2   :  { %1243 = vsyncpa [#allocation6], 1 }
 0x1d3   :  { %1244 = vsyncpa [#allocation8], 1 }
 0x1d4   :  { %1245 = vsyncpa [#allocation11], 1 }

</bundles_post_ra>
